<compile_context>
chip_gen: v6e
topology: v6e:2x2x1
jax: 0.10.0
libtpu: 0.0.40
codegen_flags: <defaults>
</compile_context>

<pallas_src>
import jax
import jax.numpy as jnp
from jax import lax
from jax.experimental import pallas as pl
from jax.experimental.pallas import tpu as pltpu


def _round_up(x: int, m: int) -> int:
    return ((x + m - 1) // m) * m


def _make_rbfnet_kernel(gamma: float, n_valid: int, block_n: int):
    inv_gamma = 1.0 / float(gamma)
    needs_mask = (n_valid % block_n) != 0

    def kernel(xte_ref, m_ref, xtr_ref, ytr_ref, out_ref,
               zmt_ref, c2_ref, num_ref, den_ref):
        k = pl.program_id(1)

        # Per T-tile setup: x_test @ M^T, centers_norm2, and accumulator init.
        @pl.when(k == 0)
        def _init():
            x_test = xte_ref[...]                                           # (tT, D)
            # zmt[t, d] = sum_e x_test[t, e] * M[d, e]  (== x_test @ M^T, no .T copy)
            zmt = lax.dot_general(
                x_test, m_ref[...],
                dimension_numbers=(((1,), (1,)), ((), ())),
                preferred_element_type=jnp.float32)                         # (tT, D)
            zmt_ref[...] = zmt
            # centers_norm2 = diag(x_test @ M @ x_test^T); identical via M or M^T.
            c2_ref[...] = jnp.sum(zmt * x_test, axis=-1, keepdims=True)     # (tT, 1)
            num_ref[...] = jnp.zeros_like(num_ref)
            den_ref[...] = jnp.zeros_like(den_ref)

        x_train = xtr_ref[...]                                              # (tN, D)
        xm = jnp.dot(x_train, m_ref[...],
                     preferred_element_type=jnp.float32)                    # (tN, D)
        s2 = jnp.sum(xm * x_train, axis=-1)                                 # (tN,)

        # cross[t, n] = x_train[n] @ M @ x_test[t]^T (matches torch order for general M),
        # contraction on the last dims -> no materialized transpose.
        cross = lax.dot_general(
            zmt_ref[...], x_train,
            dimension_numbers=(((1,), (1,)), ((), ())),
            preferred_element_type=jnp.float32)                             # (tT, tN)

        d2 = c2_ref[...] - 2.0 * cross + s2[None, :]
        dist = jnp.sqrt(jnp.maximum(d2, 0.0))
        kmat = jnp.exp(dist * (-inv_gamma))                                 # (tT, tN)

        if needs_mask:
            # Zero out contributions from padded x_train rows in the last N tile.
            col = lax.broadcasted_iota(jnp.int32, kmat.shape, 1) + k * block_n
            kmat = jnp.where(col < n_valid, kmat, 0.0)

        num_ref[...] += jnp.dot(kmat, ytr_ref[...],
                                preferred_element_type=jnp.float32)         # (tT, Pp)
        den_ref[...] += jnp.sum(kmat, axis=-1, keepdims=True)               # (tT, 1)

        @pl.when(k == pl.num_programs(1) - 1)
        def _finalize():
            # Row-normalize once on the small (tT, Pp) accumulator instead of the
            # full (tT, tN) kernel matrix.
            out_ref[...] = num_ref[...] * pl.reciprocal(den_ref[...], approx=False)

    return kernel


def rbfnet_forward(x_train, y_train, x_test, M, gamma, *, block_t=128, block_n=128):
    """Mirrors RBFnet.forward: returns (output, M)."""
    N, D = x_train.shape
    T = x_test.shape[0]
    P = y_train.shape[1]

    Dp = _round_up(D, 128)
    Np = _round_up(N, block_n)
    Tp = _round_up(T, block_t)
    Pp = _round_up(P, 128)

    f32 = jnp.float32
    xtr = jnp.pad(x_train.astype(f32), ((0, Np - N), (0, Dp - D)))
    xte = jnp.pad(x_test.astype(f32), ((0, Tp - T), (0, Dp - D)))
    Mp = jnp.pad(M.astype(f32), ((0, Dp - D), (0, Dp - D)))
    ytr = jnp.pad(y_train.astype(f32), ((0, Np - N), (0, Pp - P)))

    grid = (Tp // block_t, Np // block_n)

    cost = pl.CostEstimate(
        flops=int(2 * (Tp * Dp * Dp + Np * Dp * Dp + Tp * Np * Dp + Tp * Np * Pp)),
        transcendentals=int(Tp * Np),
        bytes_accessed=int(4 * (Np * Dp + Tp * Dp + Dp * Dp + Np * Pp + Tp * Pp)),
    )

    out_padded = pl.pallas_call(
        _make_rbfnet_kernel(gamma=float(gamma), n_valid=N, block_n=block_n),
        out_shape=jax.ShapeDtypeStruct((Tp, Pp), jnp.float32),
        grid_spec=pltpu.PrefetchScalarGridSpec(
            num_scalar_prefetch=0,
            grid=grid,
            in_specs=[
                pl.BlockSpec((block_t, Dp), lambda i, k: (i, 0)),   # x_test  (per T tile)
                pl.BlockSpec((Dp, Dp), lambda i, k: (0, 0)),        # M       (resident)
                pl.BlockSpec((block_n, Dp), lambda i, k: (k, 0)),   # x_train (streamed over N)
                pl.BlockSpec((block_n, Pp), lambda i, k: (k, 0)),   # y_train (streamed over N)
            ],
            out_specs=pl.BlockSpec((block_t, Pp), lambda i, k: (i, 0)),
            scratch_shapes=[
                pltpu.VMEM((block_t, Dp), jnp.float32),   # x_test @ M^T
                pltpu.VMEM((block_t, 1), jnp.float32),    # centers_norm2
                pltpu.VMEM((block_t, Pp), jnp.float32),   # numerator accumulator
                pltpu.VMEM((block_t, 1), jnp.float32),    # denominator accumulator
            ],
        ),
        compiler_params=pltpu.CompilerParams(
            dimension_semantics=("parallel", "arbitrary"),
            vmem_limit_bytes=48 << 20,   # headroom-safe on v7x (64 MiB physical)
        ),
        cost_estimate=cost,
    )(xte, Mp, xtr, ytr)

    return out_padded[:T, :P], M


def rbfnet_forward_ref(x_train, y_train, x_test, M, gamma):
    """Pure-JAX reference, faithful to the torch module."""
    xM = x_train @ M
    zM = x_test @ M
    s2 = jnp.sum(xM * x_train, -1)
    c2 = jnp.sum(zM * x_test, -1)
    d = -2.0 * (xM @ x_test.T) + s2[:, None] + c2[None, :]
    d = jnp.sqrt(jnp.maximum(d, 0.0))
    K = jnp.exp(-d / gamma)
    KT = K.T
    KT = KT / jnp.sum(KT, axis=1, keepdims=True)
    return KT @ y_train, M


if __name__ == "__main__":
    # Small shapes (feature dim stands in for the module's 3072); deliberately
    # non-tile-aligned to exercise the padding + in-kernel masking paths.
    N, T, D, P = 320, 200, 200, 8
    gamma = 2.0

    key = jax.random.PRNGKey(0)
    k1, k2, k3 = jax.random.split(key, 3)
    x_train = jax.random.normal(k1, (N, D), dtype=jnp.float32)
    x_test = jax.random.normal(k2, (T, D), dtype=jnp.float32)
    y_train = jax.random.normal(k3, (N, P), dtype=jnp.float32)
    M = jnp.eye(D, dtype=jnp.float32)  # deterministic init, as in __init__

    out, M_out = rbfnet_forward(x_train, y_train, x_test, M, gamma)
    out = jax.block_until_ready(out)

    ref_out, _ = rbfnet_forward_ref(x_train, y_train, x_test, M, gamma)
    assert out.shape == (T, P)
    assert jnp.allclose(out, ref_out, atol=1e-4, rtol=1e-4), float(
        jnp.max(jnp.abs(out - ref_out)))

    print("KERNEL_OK")
</pallas_src>

<mosaic_0001>
module attributes {stable_mosaic.version = 11 : i64} {
  func.func @kernel(%arg0: i32, %arg1: i32, %arg2: memref<128x256xf32, #tpu.memory_space<vmem>>, %arg3: memref<256x256xf32, #tpu.memory_space<vmem>>, %arg4: memref<128x256xf32, #tpu.memory_space<vmem>>, %arg5: memref<128x128xf32, #tpu.memory_space<vmem>>, %arg6: memref<128x128xf32, #tpu.memory_space<vmem>>, %arg7: memref<128x256xf32, #tpu.memory_space<vmem>>, %arg8: memref<128x1xf32, #tpu.memory_space<vmem>>, %arg9: memref<128x128xf32, #tpu.memory_space<vmem>>, %arg10: memref<128x1xf32, #tpu.memory_space<vmem>>) attributes {dimension_semantics = [#tpu.dimension_semantics<parallel>, #tpu.dimension_semantics<arbitrary>], iteration_bounds = array<i64: 2, 3>, scalar_prefetch = 0 : i64, scratch_operands = 4 : i64, tpu.core_type = #tpu.core_type<tc>, window_params = [{transform_indices = @transform_0, window_bounds = array<i64: 128, 256>}, {pipeline_mode = #tpu.pipeline_mode<synchronous>, transform_indices = @transform_1, window_bounds = array<i64: 256, 256>}, {transform_indices = @transform_2, window_bounds = array<i64: 128, 256>}, {transform_indices = @transform_3, window_bounds = array<i64: 128, 128>}, {transform_indices = @transform_4, window_bounds = array<i64: 128, 128>}]} {
    %c0_i32 = arith.constant 0 : i32
    %0 = arith.cmpi eq, %arg1, %c0_i32 : i32
    %1 = arith.extui %0 : i1 to i32
    %c0_i32_0 = arith.constant 0 : i32
    %2 = arith.cmpi ne, %1, %c0_i32_0 : i32
    scf.if %2 {
      %c0_27 = arith.constant 0 : index
      %c0_28 = arith.constant 0 : index
      %45 = vector.load %arg2[%c0_27, %c0_28] : memref<128x256xf32, #tpu.memory_space<vmem>>, vector<128x256xf32>
      %c0_29 = arith.constant 0 : index
      %c0_30 = arith.constant 0 : index
      %46 = vector.load %arg3[%c0_29, %c0_30] : memref<256x256xf32, #tpu.memory_space<vmem>>, vector<256x256xf32>
      %cst_31 = arith.constant dense<0.000000e+00> : vector<128x256xf32>
      %47 = tpu.matmul %45, %46, %cst_31 {dimension_numbers = #tpu.dot_dimension_numbers<[1], [1], [0], [0], [0, 0, 1, 0], [], []>} : vector<128x256xf32>, vector<256x256xf32>, vector<128x256xf32> -> vector<128x256xf32>
      %c0_32 = arith.constant 0 : index
      %c0_33 = arith.constant 0 : index
      %48 = vector.load %arg7[%c0_32, %c0_33] : memref<128x256xf32, #tpu.memory_space<vmem>>, vector<128x256xf32>
      tpu.vector_store %arg7[%c0_32, %c0_33], %47 {strides = array<i32>} : memref<128x256xf32, #tpu.memory_space<vmem>>, vector<128x256xf32>,
      %49 = arith.mulf %47, %45 : vector<128x256xf32>
      %cst_34 = arith.constant dense<0.000000e+00> : vector<128xf32>
      %50 = vector.multi_reduction <add>, %49, %cst_34 [1] : vector<128x256xf32> to vector<128xf32>
      %51 = vector.shape_cast %50 : vector<128xf32> to vector<128x1xf32>
      %c0_35 = arith.constant 0 : index
      %c0_36 = arith.constant 0 : index
      %52 = vector.load %arg8[%c0_35, %c0_36] : memref<128x1xf32, #tpu.memory_space<vmem>>, vector<128x1xf32>
      tpu.vector_store %arg8[%c0_35, %c0_36], %51 {strides = array<i32>} : memref<128x1xf32, #tpu.memory_space<vmem>>, vector<128x1xf32>,
      %cst_37 = arith.constant 0.000000e+00 : f32
      %53 = vector.broadcast %cst_37 : f32 to vector<128x128xf32>
      %c0_38 = arith.constant 0 : index
      %c0_39 = arith.constant 0 : index
      %54 = vector.load %arg9[%c0_38, %c0_39] : memref<128x128xf32, #tpu.memory_space<vmem>>, vector<128x128xf32>
      tpu.vector_store %arg9[%c0_38, %c0_39], %53 {strides = array<i32>} : memref<128x128xf32, #tpu.memory_space<vmem>>, vector<128x128xf32>,
      %cst_40 = arith.constant 0.000000e+00 : f32
      %55 = vector.broadcast %cst_40 : f32 to vector<128x1xf32>
      %c0_41 = arith.constant 0 : index
      %c0_42 = arith.constant 0 : index
      %56 = vector.load %arg10[%c0_41, %c0_42] : memref<128x1xf32, #tpu.memory_space<vmem>>, vector<128x1xf32>
      tpu.vector_store %arg10[%c0_41, %c0_42], %55 {strides = array<i32>} : memref<128x1xf32, #tpu.memory_space<vmem>>, vector<128x1xf32>,
    } else {
    }
    %c0 = arith.constant 0 : index
    %c0_1 = arith.constant 0 : index
    %3 = vector.load %arg4[%c0, %c0_1] : memref<128x256xf32, #tpu.memory_space<vmem>>, vector<128x256xf32>
    %c0_2 = arith.constant 0 : index
    %c0_3 = arith.constant 0 : index
    %4 = vector.load %arg3[%c0_2, %c0_3] : memref<256x256xf32, #tpu.memory_space<vmem>>, vector<256x256xf32>
    %cst = arith.constant dense<0.000000e+00> : vector<128x256xf32>
    %5 = tpu.matmul %3, %4, %cst {dimension_numbers = #tpu.dot_dimension_numbers<[1], [0], [0], [1], [0, 0, 1, 1], [], []>} : vector<128x256xf32>, vector<256x256xf32>, vector<128x256xf32> -> vector<128x256xf32>
    %6 = arith.mulf %5, %3 : vector<128x256xf32>
    %cst_4 = arith.constant dense<0.000000e+00> : vector<128xf32>
    %7 = vector.multi_reduction <add>, %6, %cst_4 [1] : vector<128x256xf32> to vector<128xf32>
    %c0_5 = arith.constant 0 : index
    %c0_6 = arith.constant 0 : index
    %8 = vector.load %arg7[%c0_5, %c0_6] : memref<128x256xf32, #tpu.memory_space<vmem>>, vector<128x256xf32>
    %cst_7 = arith.constant dense<0.000000e+00> : vector<128x128xf32>
    %9 = tpu.matmul %8, %3, %cst_7 {dimension_numbers = #tpu.dot_dimension_numbers<[1], [1], [0], [0], [0, 0, 1, 0], [], []>} : vector<128x256xf32>, vector<128x256xf32>, vector<128x128xf32> -> vector<128x128xf32>
    %c0_8 = arith.constant 0 : index
    %c0_9 = arith.constant 0 : index
    %10 = vector.load %arg8[%c0_8, %c0_9] : memref<128x1xf32, #tpu.memory_space<vmem>>, vector<128x1xf32>
    %cst_10 = arith.constant 2.000000e+00 : f32
    %11 = vector.broadcast %cst_10 : f32 to vector<128x128xf32>
    %12 = arith.mulf %11, %9 : vector<128x128xf32>
    %13 = vector.broadcast %10 : vector<128x1xf32> to vector<128x128xf32>
    %14 = arith.subf %13, %12 : vector<128x128xf32>
    %15 = vector.shape_cast %7 : vector<128xf32> to vector<1x128xf32>
    %16 = vector.broadcast %15 : vector<1x128xf32> to vector<128x128xf32>
    %17 = arith.addf %14, %16 : vector<128x128xf32>
    %cst_11 = arith.constant 0.000000e+00 : f32
    %18 = vector.broadcast %cst_11 : f32 to vector<128x128xf32>
    %19 = arith.maximumf %17, %18 : vector<128x128xf32>
    %20 = math.sqrt %19 : vector<128x128xf32>
    %cst_12 = arith.constant -5.000000e-01 : f32
    %21 = vector.broadcast %cst_12 : f32 to vector<128x128xf32>
    %22 = arith.mulf %20, %21 : vector<128x128xf32>
    %23 = math.exp %22 : vector<128x128xf32>
    %24 = tpu.iota {dimensions = array<i32: 1>} : vector<128x128xi32>
    %c128_i32 = arith.constant 128 : i32
    %25 = arith.muli %arg1, %c128_i32 : i32
    %26 = vector.broadcast %25 : i32 to vector<128x128xi32>
    %27 = arith.addi %24, %26 : vector<128x128xi32>
    %c320_i32 = arith.constant 320 : i32
    %28 = vector.broadcast %c320_i32 : i32 to vector<128x128xi32>
    %29 = arith.cmpi slt, %27, %28 : vector<128x128xi32>
    %cst_13 = arith.constant 0.000000e+00 : f32
    %30 = vector.broadcast %cst_13 : f32 to vector<128x128xf32>
    %31 = arith.select %29, %23, %30 : vector<128x128xi1>, vector<128x128xf32>
    %c0_14 = arith.constant 0 : index
    %c0_15 = arith.constant 0 : index
    %32 = vector.load %arg9[%c0_14, %c0_15] : memref<128x128xf32, #tpu.memory_space<vmem>>, vector<128x128xf32>
    %c0_16 = arith.constant 0 : index
    %c0_17 = arith.constant 0 : index
    %33 = vector.load %arg5[%c0_16, %c0_17] : memref<128x128xf32, #tpu.memory_space<vmem>>, vector<128x128xf32>
    %cst_18 = arith.constant dense<0.000000e+00> : vector<128x128xf32>
    %34 = tpu.matmul %31, %33, %cst_18 {dimension_numbers = #tpu.dot_dimension_numbers<[1], [0], [0], [1], [0, 0, 1, 1], [], []>} : vector<128x128xf32>, vector<128x128xf32>, vector<128x128xf32> -> vector<128x128xf32>
    %35 = arith.addf %32, %34 : vector<128x128xf32>
    %c0_19 = arith.constant 0 : index
    %c0_20 = arith.constant 0 : index
    %36 = vector.load %arg9[%c0_19, %c0_20] : memref<128x128xf32, #tpu.memory_space<vmem>>, vector<128x128xf32>
    tpu.vector_store %arg9[%c0_19, %c0_20], %35 {strides = array<i32>} : memref<128x128xf32, #tpu.memory_space<vmem>>, vector<128x128xf32>,
    %c0_21 = arith.constant 0 : index
    %c0_22 = arith.constant 0 : index
    %37 = vector.load %arg10[%c0_21, %c0_22] : memref<128x1xf32, #tpu.memory_space<vmem>>, vector<128x1xf32>
    %cst_23 = arith.constant dense<0.000000e+00> : vector<128xf32>
    %38 = vector.multi_reduction <add>, %31, %cst_23 [1] : vector<128x128xf32> to vector<128xf32>
    %39 = vector.shape_cast %38 : vector<128xf32> to vector<128x1xf32>
    %40 = arith.addf %37, %39 : vector<128x1xf32>
    %c0_24 = arith.constant 0 : index
    %c0_25 = arith.constant 0 : index
    %41 = vector.load %arg10[%c0_24, %c0_25] : memref<128x1xf32, #tpu.memory_space<vmem>>, vector<128x1xf32>
    tpu.vector_store %arg10[%c0_24, %c0_25], %40 {strides = array<i32>} : memref<128x1xf32, #tpu.memory_space<vmem>>, vector<128x1xf32>,
    %c2_i32 = arith.constant 2 : i32
    %42 = arith.cmpi eq, %arg1, %c2_i32 : i32
    %43 = arith.extui %42 : i1 to i32
    %c0_i32_26 = arith.constant 0 : i32
    %44 = arith.cmpi ne, %43, %c0_i32_26 : i32
    scf.if %44 {
      %c0_27 = arith.constant 0 : index
      %c0_28 = arith.constant 0 : index
      %45 = vector.load %arg9[%c0_27, %c0_28] : memref<128x128xf32, #tpu.memory_space<vmem>>, vector<128x128xf32>
      %c0_29 = arith.constant 0 : index
      %c0_30 = arith.constant 0 : index
      %46 = vector.load %arg10[%c0_29, %c0_30] : memref<128x1xf32, #tpu.memory_space<vmem>>, vector<128x1xf32>
      %47 = tpu.reciprocal %46 : vector<128x1xf32> -> vector<128x1xf32>
      %48 = vector.broadcast %47 : vector<128x1xf32> to vector<128x128xf32>
      %49 = arith.mulf %45, %48 : vector<128x128xf32>
      %c0_31 = arith.constant 0 : index
      %c0_32 = arith.constant 0 : index
      %50 = vector.load %arg6[%c0_31, %c0_32] : memref<128x128xf32, #tpu.memory_space<vmem>>, vector<128x128xf32>
      tpu.vector_store %arg6[%c0_31, %c0_32], %49 {strides = array<i32>} : memref<128x128xf32, #tpu.memory_space<vmem>>, vector<128x128xf32>,
    } else {
    }
    return
  }
  func.func @transform_0(%arg0: i32, %arg1: i32) -> (i32, i32) {
    %c0_i32 = arith.constant 0 : i32
    %c0_i32_0 = arith.constant 0 : i32
    return %arg0, %c0_i32 : i32, i32
  }
  func.func @transform_1(%arg0: i32, %arg1: i32) -> (i32, i32) {
    %c0_i32 = arith.constant 0 : i32
    %c0_i32_0 = arith.constant 0 : i32
    %c0_i32_1 = arith.constant 0 : i32
    return %c0_i32, %c0_i32_0 : i32, i32
  }
  func.func @transform_2(%arg0: i32, %arg1: i32) -> (i32, i32) {
    %c0_i32 = arith.constant 0 : i32
    %c0_i32_0 = arith.constant 0 : i32
    return %arg1, %c0_i32 : i32, i32
  }
  func.func @transform_3(%arg0: i32, %arg1: i32) -> (i32, i32) {
    %c0_i32 = arith.constant 0 : i32
    %c0_i32_0 = arith.constant 0 : i32
    return %arg1, %c0_i32 : i32, i32
  }
  func.func @transform_4(%arg0: i32, %arg1: i32) -> (i32, i32) {
    %c0_i32 = arith.constant 0 : i32
    %c0_i32_0 = arith.constant 0 : i32
    return %arg0, %c0_i32 : i32, i32
  }
}

</mosaic_0001>

<bundles_post_ra>
// kernel: tpu_custom_call.1
= control target key start
LH: loop header
LB: loop body
LE: loop exit
PB: predicated region body
PF: predicated region fallthrough
CT: control target
= control target key end

     0   :  { %s4245_s0 = inlined_call_operand.hbm [shape: f32[256,256], index: 0, kind: input, shape index: {}]   ;;  %s4246_s1 = inlined_call_operand.hbm [shape: f32[256,256], index: 1, kind: input, shape index: {}]   ;;  %s4247_s2 = inlined_call_operand.hbm [shape: f32[384,256], index: 2, kind: input, shape index: {}]   ;;  %s4248_s3 = inlined_call_operand.hbm [shape: f32[384,128], index: 3, kind: input, shape index: {}]   ;;  %s4249_s4 = inlined_call_operand.hbm [shape: f32[256,128], index: 4, kind: output, shape index: {}]  }
   0x1   :  { %4262 = sst [smem:[#allocation25_spill]] %s4245_s0 }
   0x2   :  { %4263 = sst [smem:[#allocation26_spill]] %s4247_s2 }
   0x3   :  { %9 = vsyncpa [#allocation7], 0 }
   0x4   :  { %11 = vsyncpa [#allocation7 + $0x1], 0 }
   0x5   :  { %12 = vsyncpa [#allocation10], 0 }
   0x6   :  { %13 = vsyncpa [#allocation8], 0 }
   0x7   :  { %15 = vsyncpa [#allocation8 + $0x1], 0  ;;  %s3088_s15 = smov 0   ;;  %s3090_s16 = smov 0  }
   0x8   :  { %s3092_s17 = smov 0   ;;  %s3094_s18 = smov 0  }
   0x9   :  { %s3096_s19 = smov 0   ;;  %s3098_s20 = smov 0  }
   0xa   :  { %s3100_s21 = smov 0   ;;  %s3102_s22 = smov 0  }
   0xb   :  { %s3104_s23 = smov 0   ;;  %s3106_s24 = smov 0  }
   0xc   :  { %s3108_s25 = smov 0  }
   0xd LB: > { %4264 = sst [smem:[#allocation18_spill]] %s3027_s20  ;;  %s33_s26 = sadd.s32 1, %s3043_s24  ;;  %s3047_s25 = sphi %s3108_s25, %s21_s25   ;;  %s3043_s24 = sphi %s3106_s24, %s4293_s24   ;;  %s3039_s23 = sphi %s3104_s23, %s4300_s23   ;;  %s3035_s22 = sphi %s3102_s22, %s4291_s22   ;;  %s3031_s21 = sphi %s3100_s21, %s4299_s21   ;;  %s3027_s20 = sphi %s3098_s20, %s4290_s20   ;;  %s3023_s19 = sphi %s3096_s19, %s4298_s19   ;;  %s3019_s18 = sphi %s3094_s18, %s4297_s18   ;;  %s3015_s17 = sphi %s3092_s17, %s4296_s17   ;;  %s3011_s16 = sphi %s3090_s16, %s4295_s16   ;;  %s3007_s15 = sphi %s3088_s15, %s4294_s15  }
   0xe   : > { %4265 = sst [smem:[#allocation19_spill]] %s3043_s24  ;;  %p47_p0 = scmp.ne.s32.totalorder %s3027_s20, %s3023_s19 }
   0xf   : > { %p48_p1 = scmp.eq.s32.totalorder %s3047_s25, 0  ;;  %p2608_p3 = scmp.lt.s32.totalorder %s3047_s25, 6 }
  0x10   : > { %s189_s28 = sand.u32 1, %s3047_s25   ;;  %s191_s29 = sand.u32 1, %s3027_s20  }
  0x11   : > { %p49_p2 = por %p48_p1, %p47_p0  ;;  %s2346_s30 = sshll.u32 %s191_s29, 8 }
  0x12   : > { %s2388_s5 = sshll.u32 %s3043_s24, 12  ;;  %s4266_s0 = sld [smem:[#allocation25_spill]] }
  0x13   : > { %s193_s9 = scalar_lea.vmem [#allocation6], %s2346_s30  ;;  %p3162_p4 = pnand %p2608_p3, %p49_p2 }
  0x14   : > { %s201_s10 = sshll.u32 %s193_s9, 4  ;;  %s3166_s12 = scalar_lea.sflag [#allocation7], %s189_s28  ;;  %s202_s10 = int_to_ptr.vmem [resolvable:$true] %s201_s10 }
  0x15   : > { %p2811_p5 = pneg %p3162_p4  ;;  %s2822_s13 = scalar_lea.vmem %s202_s10, 4096 }
  0x16   : > { %p2823_p6 = scmp.ne.s32.totalorder %s202_s10, %s2822_s13  ;;  %s3049_s14 = smov [#allocation6]  }
  0x17   : > { %s2827_s29 = sshll.u32 %s3049_s14, 4  ;;  %s2828_s29 = int_to_ptr.vmem [resolvable:$false] %s2827_s29 }
  0x18   : > { %s200_s8 = scalar_lea.hbm %s4266_s0, %s2388_s5  ;;  %p2825_p7 = pnand %p2823_p6, %p2811_p5 }
  0x19   : > { %s2829_s30 = scalar_lea.vmem %s2828_s29, 8192  ;;  %p2830_p9 = scmp.lt.s32.totalorder %s202_s10, %s2828_s29 }
  0x1a   : > { %p2826_p8 = pneg %p2825_p7  ;;  %p2831_p10 = scmp.lt.s32.totalorder %s2829_s30, %s2822_s13 }
  0x1c   : > { %p2832_p11 = por %p2831_p10, %p2830_p9 }
  0x1e   : > { %p2833_p12 = pnand %p2832_p11, %p2826_p8 }
  0x20   : > { %2836 = shalt.err (!%p2833_p12)
}
  0x21   : > { %s4250_s5 = smov 256   ;;  %s4252_s28 = smov 16  }
  0x22   : > { %2596 = dma.hbm_to_vmem [thread:$0]  (!%p3162_p4), %s200_s8, 4096, %s202_s10, %s3166_s12, %s4250_s5, %s4250_s5, %s4252_s28  }
  0x23   : > { %s30_s6 = sadd.s32 1, %s3039_s23  ;;  %s87_s7 = sadd.s32 1, %s3015_s17 }
  0x24   : > { %p31_p13 = scmp.ge.s32.totalorder %s30_s6, 3  ;;  %p94_p2 = scmp.ne.s32.totalorder %s3015_s17, %s3011_s16 }
  0x25   : > { %s213_s9 = sand.u32 1, %s3015_s17   ;;  %s2390_s13 = sshll.u32 %s3039_s23, 12 }
  0x26   : > { %s4302_s6 = smov (%p31_p13, %s30_s6), 0  ;;  %s4304_s26 = smov (!%p31_p13, %s33_s26), %s3043_s24 }
  0x27   : > { %4268 = sst [smem:[#allocation20_spill]] %s4302_s6  ;;  %s84_s11 = ssub.s32 %s3039_s23, %s4302_s6 }
  0x28   : > { %p96_p5 = por %p94_p2, %p48_p1  ;;  %p35_p4 = scmp.ge.s32.totalorder %s4304_s26, 2 }
  0x29   : > { %p85_p6 = scmp.eq.s32.totalorder %s84_s11, 0  ;;  %s2350_s8 = sshll.u32 %s213_s9, 8 }
  0x2a   : > { %s4269_s2 = sld [smem:[#allocation26_spill]]  ;;  %s4306_s26 = smov (%p35_p4, %s4304_s26), 0 }
  0x2b   : > { %4270 = sst [smem:[#allocation21_spill]] %s4306_s26  ;;  %s37_s5 = ssub.s32 %s3043_s24, %s4306_s26 }
  0x2c   : > { %s3199_s30 = scalar_select %p85_p6, %s3015_s17, %s87_s7  }
  0x2d   : > { %p38_p7 = scmp.eq.s32.totalorder %s37_s5, 0  ;;  %s215_s28 = scalar_lea.vmem [#allocation11], %s2350_s8 }
  0x2e   : > { %4271 = sst [smem:[#allocation22_spill]] %s3199_s30  ;;  %s223_s27 = sshll.u32 %s215_s28, 4  ;;  %s224_s27 = int_to_ptr.vmem [resolvable:$true] %s223_s27 }
  0x2f   : > { %p3205_p1 = pnand %p2608_p3, %p96_p5  ;;  %s4273_s11 = sadd.s32 1, %s3027_s20 }
  0x30   : > { %s222_s29 = scalar_lea.hbm %s4269_s2, %s2390_s13  ;;  %s2850_s13 = scalar_lea.vmem %s224_s27, 4096 }
  0x31   : > { %s3212_s10 = scalar_select %p38_p7, %s3027_s20, %s4273_s11  }
  0x32   : > { %p4254_p8 = pneg %p3205_p1  ;;  %p2851_p9 = scmp.ne.s32.totalorder %s224_s27, %s2850_s13 }
  0x33   : > { %4274 = sst [smem:[#allocation23_spill]] %s3212_s10  ;;  %s3052_s5 = smov [#allocation11]  }
  0x34   : > { %p2853_p10 = pnand %p2851_p9, %p4254_p8  ;;  %s2855_s28 = sshll.u32 %s3052_s5, 4  ;;  %s2856_s28 = int_to_ptr.vmem [resolvable:$false] %s2855_s28 }
  0x35   : > { %s2857_s7 = scalar_lea.vmem %s2856_s28, 8192  ;;  %p2858_p3 = scmp.lt.s32.totalorder %s224_s27, %s2856_s28 }
  0x36   : > { %p2854_p11 = pneg %p2853_p10  ;;  %p2859_p12 = scmp.lt.s32.totalorder %s2857_s7, %s2850_s13 }
  0x38   : > { %p2860_p13 = por %p2859_p12, %p2858_p3 }
  0x3a   : > { %p2861_p2 = pnand %p2860_p13, %p2854_p11 }
  0x3c   : > { %2864 = shalt.err (!%p2861_p2)
}
  0x3d   : > { %s4275_s8 = smov 16   ;;  %s4276_s14 = smov 256  }
  0x3e   : > { %2599 = dma.hbm_to_vmem [thread:$0]  (!%p3205_p1), %s222_s29, 4096, %s224_s27, %s3166_s12, %s4276_s14, %s4276_s14, %s4275_s8  }
  0x3f   : > { %s3226_s11 = sadd.s32 4294967295, %s3047_s25   ;;  %s2342_s13 = sadd.s32 4294967294, %s3047_s25  }
  0x40   : > { %p53_p5 = scmp.ne.s32.totalorder %s3023_s19, %s3019_s18  ;;  %p54_p4 = scmp.eq.s32.totalorder %s3226_s11, 0 }
  0x41   : > { %p100_p6 = scmp.ne.s32.totalorder %s3011_s16, %s3007_s15  ;;  %p150_p7 = scmp.eq.s32.totalorder %s3226_s11, 5 }
  0x42   : > { %p156_p9 = scmp.eq.s32.totalorder %s2342_s13, 5  ;;  %p3237_p10 = por %p54_p4, %p53_p5 }
  0x43   : > { %p3243_p11 = por %p100_p6, %p54_p4  ;;  %p3250_p3 = por %p150_p7, %p47_p0 }
  0x44   : > { %p3254_p12 = por %p156_p9, %p53_p5  ;;  %p2343_p13 = scmp.ge.s32.totalorder %s3047_s25, 1 }
  0x45   : > { %s4278_s27 = scalar_select %p3243_p11, 1, 0 }
  0x46   : > { %s4279_s29 = scalar_select %p3250_p3, 1, 0 }
  0x47   : > { %s4280_s15 = scalar_select %p3254_p12, 1, 0 }
  0x48   : > { %p163_p2 = scmp.lt.s32.totalorder %s3047_s25, 7  ;;  %s3053_s7 = smov [#allocation9]  }
  0x49   : > { %4281 = sst [smem:[#allocation24_spill]] %s4280_s15  ;;  %s175_s13 = sshll.u32 %s3053_s7, 4  ;;  %s176_s13 = int_to_ptr.vmem [resolvable:$true] %s175_s13 }
  0x4a   : > { %p3260_p8 = pnand %p2343_p13, %p163_p2  ;;  %s2354_s2 = sshll.u32 %s213_s9, 7 }
  0x4b   : > { %s2391_s26 = sshll.u32 %s3039_s23, 11  ;;  %s237_s6 = scalar_lea.vmem [#allocation12], %s2354_s2 }
  0x4c   : > { %p2589_p0 = pneg %p3260_p8  ;;  %s244_s24 = sshll.u32 %s237_s6, 4  ;;  %s3276_s24 = int_to_ptr.vmem [resolvable:$true] %s244_s24 }
  0x4d   : > { %s3274_s30 = scalar_lea.hbm %s4248_s3, %s2391_s26  ;;  %s2876_s15 = scalar_lea.vmem %s176_s13, 8192 }
  0x4e   : > { %p2590_p5 = pnand %p2589_p0, %p54_p4  ;;  %p2877_p7 = scmp.ne.s32.totalorder %s176_s13, %s2876_s15 }
  0x4f   : > { %p2884_p2 = scmp.lt.s32.totalorder %s176_s13, %s176_s13  ;;  %p2885_p12 = scmp.lt.s32.totalorder %s2876_s15, %s2876_s15 }
  0x50   : > { %p2867_p6 = pneg %p2590_p5 }
  0x51   : > { %p2886_p3 = por %p2885_p12, %p2884_p2 }
  0x52   : > { %p2879_p9 = pnand %p2877_p7, %p2867_p6 }
  0x54   : > { %p2880_p13 = pneg %p2879_p9 }
  0x56   : > { %p2887_p11 = pnand %p2886_p3, %p2880_p13 }
  0x58   : > { %2890 = shalt.err (!%p2887_p11)
}
  0x59   : > { %2592 = dma.hbm_to_vmem [thread:$0]  (!%p2590_p5), %s4246_s1, 8192, %s176_s13, [#allocation10], %s4276_s14, %s4276_s14, %s4275_s8  }
  0x5a   : > { %s2904_s20 = scalar_lea.vmem %s3276_s24, 2048  ;;  %p4283_p6 = pneg %p3205_p1 }
  0x5b   : > { %p2905_p0 = scmp.ne.s32.totalorder %s3276_s24, %s2904_s20  ;;  %s3054_s26 = smov [#allocation12]  }
  0x5c   : > { %s2909_s9 = sshll.u32 %s3054_s26, 4  ;;  %s2910_s9 = int_to_ptr.vmem [resolvable:$false] %s2909_s9 }
  0x5d   : > { %p2907_p7 = pnand %p2905_p0, %p4283_p6  ;;  %s2911_s10 = scalar_lea.vmem %s2910_s9, 4096 }
  0x5e   : > { %p2912_p11 = scmp.lt.s32.totalorder %s3276_s24, %s2910_s9  ;;  %p2913_p3 = scmp.lt.s32.totalorder %s2911_s10, %s2904_s20 }
  0x5f   : > { %p2908_p9 = pneg %p2907_p7 }
  0x60   : > { %p2914_p12 = por %p2913_p3, %p2912_p11 }
  0x62   : > { %p2915_p13 = pnand %p2914_p12, %p2908_p9 }
  0x64   : > { %2918 = shalt.err (!%p2915_p13)
}
  0x65   : > { %s3055_s15 = smov 128   ;;  %s3056_s8 = smov 8  }
  0x66   : > { %2602 = dma.hbm_to_vmem [thread:$0]  (!%p3205_p1), %s3274_s30, 2048, %s3276_s24, %s3166_s12, %s3055_s15, %s3055_s15, %s3056_s8  }
  0x67   : > { %256 = sbr.rel (%p3260_p8) target bundleno = 1550 (0x60e), region = 36  ;;  %s258_s14 = sand.u32 (!%p3260_p8), 1, %s3226_s11  }
  0x68   : > { %s3299_s7 = sand.u32 (!%p3260_p8), 1, %s3023_s19   ;;  %s259_s2 = scalar_lea.sflag (!%p3260_p8), [#allocation7], %s258_s14 }
  0x69   : > { %s2358_s13 = sshll.u32 (!%p3260_p8), %s3299_s7, 8 }
  0x6a   : > { %s3302_s6 = scalar_lea.vmem (!%p3260_p8), [#allocation6], %s2358_s13 }
  0x6c   : > { %2990 = dma.done.wait (%p3237_p10), %s259_s2, 4096  }
  0x6d   : > { %2992 = vsyncadd (%p3237_p10), %s259_s2, 4294963200 }
  0x6e   : > { %2994 = dma.done.wait (%p54_p4), [#allocation10], 8192  }
  0x6f   : > { %2996 = vsyncadd (%p54_p4), [#allocation10], 4294959104  ;;  %s273_s0 = sand.u32 1, %s3011_s16   ;;  %p4284_p1 = scmp.ne.s32.totalorder %s4278_s27, 0 }
  0x70   : > { %s2360_s24 = sshll.u32 %s273_s0, 8 }
  0x71   : > { %s3313_s12 = scalar_lea.vmem [#allocation11], %s2360_s24 }
  0x72   : > { %2998 = dma.done.wait (%p4284_p1), %s259_s2, 6144  }
  0x73   : > { %3000 = vsyncadd (%p4284_p1), %s259_s2, 4294961152  ;;  %s2361_s30 = sshll.u32 %s273_s0, 7  ;;  %s2362_s5 = sshll.u32 %s3299_s7, 7 }
  0x74   : > { %s3320_s28 = scalar_lea.vmem [#allocation12], %s2361_s30  ;;  %s3322_s20 = scalar_lea.vmem [#allocation13], %s2362_s5 }
  0x75   : > { %p2363_p8 = scmp.ne.s32.totalorder %s3031_s21, 0 }
  0x77   : > { %326 = sbr.rel (%p2363_p8) target bundleno = 623 (0x26f), region = 56 }
  0x7c   : > { %v390_v0 = vld [vmem:[#allocation9 + $0xf8] sm:$0xff]  ;;  %v389_v1 = vld [vmem:[#allocation9 + $0xf0] sm:$0xff]  ;;  %v388_v2 = vld [vmem:[#allocation9 + $0xe8] sm:$0xff]  ;;  %vm696_vm0 = vcmask 7168  }
  0x7d   : > { %423 = vmatprep.subr.mxu0 %v390_v0  ;;  %2481 = vmatprep.subr.mxu1 %v390_v0  ;;  %v387_v3 = vld [vmem:[#allocation9 + $0xe0] sm:$0xff]  ;;  %v386_v4 = vld [vmem:[#allocation9 + $0xd8] sm:$0xff]  ;;  %v385_v5 = vld [vmem:[#allocation9 + $0xd0] sm:$0xff] }
  0x7e   : > { %424 = vmatpush1.xpose.msra.mxu0 %v389_v1  ;;  %2513 = vmatpush1.xpose.msra.mxu1 %v389_v1  ;;  %v384_v6 = vld [vmem:[#allocation9 + $0xc8] sm:$0xff]  ;;  %v383_v7 = vld [vmem:[#allocation9 + $0xc0] sm:$0xff]  ;;  %v382_v8 = vld [vmem:[#allocation9 + $0xb8] sm:$0xff] }
  0x7f   : > { %425 = vmatprep.subr.mxu0 %v388_v2  ;;  %2482 = vmatprep.subr.mxu1 %v388_v2  ;;  %v381_v9 = vld [vmem:[#allocation9 + $0xb0] sm:$0xff]  ;;  %v380_v10 = vld [vmem:[#allocation9 + $0xa8] sm:$0xff]  ;;  %v379_v11 = vld [vmem:[#allocation9 + $0xa0] sm:$0xff] }
  0x80   : > { %v378_v12 = vld [vmem:[#allocation9 + $0x98] sm:$0xff]  ;;  %v3326_v13 = vld [vmem:[%s3302_s6 + $0x8] sm:$0xff]  ;;  %v377_v15 = vld [vmem:[#allocation9 + $0x90] sm:$0xff] }
  0x81   : > { %v3329_v14 = vld [vmem:[%s3302_s6 + $0x88] sm:$0xff]  ;;  %487 = vmatprep.mubr.f32.mxu0 %v3326_v13  ;;  %v375_v17 = vld [vmem:[#allocation9 + $0x80] sm:$0xff]  ;;  %v374_v18 = vld [vmem:[#allocation9 + $0x78] sm:$0xff] }
  0x82   : > { %426 = vmatpush1.xpose.msra.mxu0 %v387_v3  ;;  %2514 = vmatpush1.xpose.msra.mxu1 %v387_v3  ;;  %v376_v16 = vld [vmem:[#allocation9 + $0x88] sm:$0xff]  ;;  %v373_v19 = vld [vmem:[#allocation9 + $0x70] sm:$0xff]  ;;  %v371_v21 = vld [vmem:[#allocation9 + $0x60] sm:$0xff] }
  0x83   : > { %427 = vmatprep.subr.mxu0 %v386_v4  ;;  %2483 = vmatprep.subr.mxu1 %v386_v4  ;;  %v372_v20 = vld [vmem:[#allocation9 + $0x68] sm:$0xff]  ;;  %v370_v22 = vld [vmem:[#allocation9 + $0x58] sm:$0xff]  ;;  %v369_v23 = vld [vmem:[#allocation9 + $0x50] sm:$0xff] }
  0x84   : > { %535 = vmatprep.mubr.f32.mxu1 %v3329_v14  ;;  %v368_v24 = vld [vmem:[#allocation9 + $0x48] sm:$0xff]  ;;  %v367_v25 = vld [vmem:[#allocation9 + $0x40] sm:$0xff]  ;;  %v366_v26 = vld [vmem:[#allocation9 + $0x38] sm:$0xff] }
  0x85   : > { %v365_v27 = vld [vmem:[#allocation9 + $0x30] sm:$0xff]  ;;  %v364_v28 = vld [vmem:[#allocation9 + $0x28] sm:$0xff]  ;;  %v363_v29 = vld [vmem:[#allocation9 + $0x20] sm:$0xff] }
  0x86   : > { %428 = vmatpush1.xpose.msra.mxu0 %v385_v5  ;;  %2515 = vmatpush1.xpose.msra.mxu1 %v385_v5  ;;  %v362_v30 = vld [vmem:[#allocation9 + $0x18] sm:$0xff]  ;;  %v361_v31 = vld [vmem:[#allocation9 + $0x10] sm:$0xff]  ;;  %v360_v32 = vld [vmem:[#allocation9 + $0x8] sm:$0xff] }
  0x87   : > { %429 = vmatprep.subr.mxu0 %v384_v6  ;;  %2484 = vmatprep.subr.mxu1 %v384_v6  ;;  %v359_v33 = vld [vmem:[#allocation9] sm:$0xff]  ;;  %v422_v34 = vld [vmem:[#allocation9 + $0x1f8] sm:$0xff]  ;;  %v421_v35 = vld [vmem:[#allocation9 + $0x1f0] sm:$0xff] }
  0x88   : > { %v420_v36 = vld [vmem:[#allocation9 + $0x1e8] sm:$0xff]  ;;  %v419_v37 = vld [vmem:[#allocation9 + $0x1e0] sm:$0xff]  ;;  %v418_v38 = vld [vmem:[#allocation9 + $0x1d8] sm:$0xff] }
  0x89   : > { %v417_v39 = vld [vmem:[#allocation9 + $0x1d0] sm:$0xff]  ;;  %v416_v40 = vld [vmem:[#allocation9 + $0x1c8] sm:$0xff]  ;;  %v415_v41 = vld [vmem:[#allocation9 + $0x1c0] sm:$0xff] }
  0x8a   : > { %430 = vmatpush1.xpose.msra.mxu0 %v383_v7  ;;  %2516 = vmatpush1.xpose.msra.mxu1 %v383_v7  ;;  %v414_v42 = vld [vmem:[#allocation9 + $0x1b8] sm:$0xff]  ;;  %v413_v43 = vld [vmem:[#allocation9 + $0x1b0] sm:$0xff]  ;;  %v412_v44 = vld [vmem:[#allocation9 + $0x1a8] sm:$0xff] }
  0x8b   : > { %431 = vmatprep.subr.mxu0 %v382_v8  ;;  %2485 = vmatprep.subr.mxu1 %v382_v8  ;;  %v411_v45 = vld [vmem:[#allocation9 + $0x1a0] sm:$0xff]  ;;  %v410_v46 = vld [vmem:[#allocation9 + $0x198] sm:$0xff]  ;;  %v409_v47 = vld [vmem:[#allocation9 + $0x190] sm:$0xff] }
  0x8c   : > { %v408_v48 = vld [vmem:[#allocation9 + $0x188] sm:$0xff]  ;;  %v407_v49 = vld [vmem:[#allocation9 + $0x180] sm:$0xff]  ;;  %v406_v50 = vld [vmem:[#allocation9 + $0x178] sm:$0xff] }
  0x8d   : > { %v405_v51 = vld [vmem:[#allocation9 + $0x170] sm:$0xff]  ;;  %v404_v52 = vld [vmem:[#allocation9 + $0x168] sm:$0xff]  ;;  %v403_v53 = vld [vmem:[#allocation9 + $0x160] sm:$0xff] }
  0x8e   : > { %432 = vmatpush1.xpose.msra.mxu0 %v381_v9  ;;  %2517 = vmatpush1.xpose.msra.mxu1 %v381_v9  ;;  %v402_v54 = vld [vmem:[#allocation9 + $0x158] sm:$0xff]  ;;  %v401_v55 = vld [vmem:[#allocation9 + $0x150] sm:$0xff]  ;;  %v400_v56 = vld [vmem:[#allocation9 + $0x148] sm:$0xff] }
  0x8f   : > { %433 = vmatprep.subr.mxu0 %v380_v10  ;;  %2486 = vmatprep.subr.mxu1 %v380_v10  ;;  %v399_v57 = vld [vmem:[#allocation9 + $0x140] sm:$0xff]  ;;  %v398_v58 = vld [vmem:[#allocation9 + $0x138] sm:$0xff]  ;;  %v397_v59 = vld [vmem:[#allocation9 + $0x130] sm:$0xff] }
  0x90   : > { %v396_v60 = vld [vmem:[#allocation9 + $0x128] sm:$0xff]  ;;  %v395_v61 = vld [vmem:[#allocation9 + $0x120] sm:$0xff]  ;;  %v394_v62 = vld [vmem:[#allocation9 + $0x118] sm:$0xff] }
  0x91   : > { %v393_v63 = vld [vmem:[#allocation9 + $0x110] sm:$0xff]  ;;  %v392_v0 = vld [vmem:[#allocation9 + $0x108] sm:$0xff]  ;;  %v391_v1 = vld [vmem:[#allocation9 + $0x100] sm:$0xff] }
  0x92   : > { %434 = vmatpush1.xpose.msra.mxu0 %v379_v11  ;;  %2518 = vmatpush1.xpose.msra.mxu1 %v379_v11  ;;  %v3334_v2 = vld [vmem:[%s3302_s6] sm:$0xff]  ;;  %v3340_v4 = vld [vmem:[%s3302_s6 + $0x18] sm:$0xff]  ;;  %v3350_v6 = vld [vmem:[%s3302_s6 + $0x10] sm:$0xff] }
  0x93   : > { %435 = vmatprep.subr.mxu0 %v378_v12  ;;  %2487 = vmatprep.subr.mxu1 %v378_v12  ;;  %v3337_v3 = vld [vmem:[%s3302_s6 + $0x80] sm:$0xff]  ;;  %v3343_v5 = vld [vmem:[%s3302_s6 + $0x98] sm:$0xff]  ;;  %v3353_v7 = vld [vmem:[%s3302_s6 + $0x90] sm:$0xff] }
  0x94   : > { %v3356_v8 = vld [vmem:[%s3302_s6 + $0x28] sm:$0xff]  ;;  %v3365_v10 = vld [vmem:[%s3302_s6 + $0x20] sm:$0xff]  ;;  %v3372_v12 = vld [vmem:[%s3302_s6 + $0x38] sm:$0xff] }
  0x95   : > { %v3359_v9 = vld [vmem:[%s3302_s6 + $0xa8] sm:$0xff]  ;;  %v3369_v11 = vld [vmem:[%s3302_s6 + $0xa0] sm:$0xff] }
  0x96   : > { %436 = vmatpush1.xpose.msra.mxu0 %v377_v15  ;;  %2519 = vmatpush1.xpose.msra.mxu1 %v377_v15  ;;  %v3375_v15 = vld [vmem:[%s3302_s6 + $0xb8] sm:$0xff] }
  0x97   : > { %437 = vmatprep.subr.mxu0 %v376_v16  ;;  %2488 = vmatprep.subr.mxu1 %v376_v16  ;;  %v3381_v16 = vld [vmem:[%s3302_s6 + $0x30] sm:$0xff] }
  0x9a   : > { %438 = vmatpush1.xpose.msra.mxu0 %v375_v17  ;;  %2520 = vmatpush1.xpose.msra.mxu1 %v375_v17  ;;  %v3385_v17 = vld [vmem:[%s3302_s6 + $0xb0] sm:$0xff] }
  0x9b   : > { %439 = vmatprep.subr.mxu0 %v374_v18  ;;  %2489 = vmatprep.subr.mxu1 %v374_v18  ;;  %v3388_v18 = vld [vmem:[%s3302_s6 + $0x48] sm:$0xff] }
  0x9e   : > { %440 = vmatpush1.xpose.msra.mxu0 %v373_v19  ;;  %2521 = vmatpush1.xpose.msra.mxu1 %v373_v19  ;;  %v3391_v19 = vld [vmem:[%s3302_s6 + $0xc8] sm:$0xff] }
  0x9f   : > { %441 = vmatprep.subr.mxu0 %v372_v20  ;;  %2490 = vmatprep.subr.mxu1 %v372_v20  ;;  %v3397_v20 = vld [vmem:[%s3302_s6 + $0x40] sm:$0xff] }
  0xa2   : > { %442 = vmatpush1.xpose.msra.mxu0 %v371_v21  ;;  %2522 = vmatpush1.xpose.msra.mxu1 %v371_v21  ;;  %v3401_v21 = vld [vmem:[%s3302_s6 + $0xc0] sm:$0xff] }
  0xa3   : > { %443 = vmatprep.subr.mxu0 %v370_v22  ;;  %2491 = vmatprep.subr.mxu1 %v370_v22  ;;  %v3404_v22 = vld [vmem:[%s3302_s6 + $0x58] sm:$0xff] }
  0xa6   : > { %444 = vmatpush1.xpose.msra.mxu0 %v369_v23  ;;  %2523 = vmatpush1.xpose.msra.mxu1 %v369_v23  ;;  %v3407_v23 = vld [vmem:[%s3302_s6 + $0xd8] sm:$0xff] }
  0xa7   : > { %445 = vmatprep.subr.mxu0 %v368_v24  ;;  %2492 = vmatprep.subr.mxu1 %v368_v24  ;;  %v3413_v24 = vld [vmem:[%s3302_s6 + $0x50] sm:$0xff] }
  0xaa   : > { %446 = vmatpush1.xpose.msra.mxu0 %v367_v25  ;;  %2524 = vmatpush1.xpose.msra.mxu1 %v367_v25  ;;  %v3417_v25 = vld [vmem:[%s3302_s6 + $0xd0] sm:$0xff] }
  0xab   : > { %447 = vmatprep.subr.mxu0 %v366_v26  ;;  %2493 = vmatprep.subr.mxu1 %v366_v26  ;;  %v3420_v26 = vld [vmem:[%s3302_s6 + $0x68] sm:$0xff] }
  0xae   : > { %448 = vmatpush1.xpose.msra.mxu0 %v365_v27  ;;  %2525 = vmatpush1.xpose.msra.mxu1 %v365_v27  ;;  %v3423_v27 = vld [vmem:[%s3302_s6 + $0xe8] sm:$0xff] }
  0xaf   : > { %449 = vmatprep.subr.mxu0 %v364_v28  ;;  %2494 = vmatprep.subr.mxu1 %v364_v28  ;;  %v3429_v28 = vld [vmem:[%s3302_s6 + $0x60] sm:$0xff] }
  0xb2   : > { %450 = vmatpush1.xpose.msra.mxu0 %v363_v29  ;;  %2526 = vmatpush1.xpose.msra.mxu1 %v363_v29  ;;  %v3433_v29 = vld [vmem:[%s3302_s6 + $0xe0] sm:$0xff] }
  0xb3   : > { %451 = vmatprep.subr.mxu0 %v362_v30  ;;  %2495 = vmatprep.subr.mxu1 %v362_v30  ;;  %v3436_v30 = vld [vmem:[%s3302_s6 + $0x78] sm:$0xff] }
  0xb6   : > { %452 = vmatpush1.xpose.msra.mxu0 %v361_v31  ;;  %2527 = vmatpush1.xpose.msra.mxu1 %v361_v31  ;;  %v3439_v31 = vld [vmem:[%s3302_s6 + $0xf8] sm:$0xff] }
  0xb7   : > { %453 = vmatprep.subr.mxu0 %v360_v32  ;;  %2496 = vmatprep.subr.mxu1 %v360_v32  ;;  %v3445_v32 = vld [vmem:[%s3302_s6 + $0x70] sm:$0xff] }
  0xba   : > { %454 = vmatpush1.xpose.msra.mxu0 %v359_v33  ;;  %2528 = vmatpush1.xpose.msra.mxu1 %v359_v33  ;;  %v3449_v33 = vld [vmem:[%s3302_s6 + $0xf0] sm:$0xff] }
  0xbb   : > { %455 = vmatprep.subr.mxu0 %v422_v34  ;;  %2497 = vmatprep.subr.mxu1 %v422_v34  ;;  %v3057_v34 = vmov 0.0  }
  0xbc   : > { %713 = vst [vmem:[#allocation4] sm:$0xff] %v3057_v34  ;;  %714 = vst [vmem:[#allocation4 + $0x48] sm:$0xff] %v3057_v34 }
  0xbd   : > { %715 = vst [vmem:[#allocation4 + $0x68] sm:$0xff] %v3057_v34  ;;  %716 = vst [vmem:[#allocation4 + $0x78] sm:$0xff] %v3057_v34 }
  0xbe   : > { %456 = vmatpush2.xpose.msra.mxu0 %v421_v35  ;;  %2529 = vmatpush2.xpose.msra.mxu1 %v421_v35  ;;  %717 = vst [vmem:[#allocation4 + $0x8] sm:$0xff] %v3057_v34  ;;  %718 = vst [vmem:[#allocation4 + $0x50] sm:$0xff] %v3057_v34 }
  0xbf   : > { %457 = vmatprep.subr.mxu0 %v420_v36  ;;  %2498 = vmatprep.subr.mxu1 %v420_v36  ;;  %719 = vst [vmem:[#allocation4 + $0x40] sm:$0xff] %v3057_v34  ;;  %720 = vst [vmem:[#allocation4 + $0x38] sm:$0xff] %v3057_v34 }
  0xc0   : > { %721 = vst [vmem:[#allocation4 + $0x70] sm:$0xff] %v3057_v34  ;;  %722 = vst [vmem:[#allocation4 + $0x60] sm:$0xff] %v3057_v34 }
  0xc1   : > { %723 = vst [vmem:[#allocation4 + $0x18] sm:$0xff] %v3057_v34  ;;  %724 = vst [vmem:[#allocation4 + $0x20] sm:$0xff] %v3057_v34 }
  0xc2   : > { %458 = vmatpush2.xpose.msra.mxu0 %v419_v37  ;;  %2530 = vmatpush2.xpose.msra.mxu1 %v419_v37  ;;  %725 = vst [vmem:[#allocation4 + $0x10] sm:$0xff] %v3057_v34  ;;  %726 = vst [vmem:[#allocation4 + $0x30] sm:$0xff] %v3057_v34 }
  0xc3   : > { %459 = vmatprep.subr.mxu0 %v418_v38  ;;  %2499 = vmatprep.subr.mxu1 %v418_v38  ;;  %727 = vst [vmem:[#allocation4 + $0x28] sm:$0xff] %v3057_v34  ;;  %728 = vst [vmem:[#allocation4 + $0x58] sm:$0xff] %v3057_v34 }
  0xc4   : > { %729 = vst.msk [vmem:[#allocation5] sm:$0xff] %vm696_vm0, %v3057_v34  ;;  %730 = vst.msk [vmem:[#allocation5 + $0x8] sm:$0xff] %vm696_vm0, %v3057_v34 }
  0xc5   : > { %731 = vst.msk [vmem:[#allocation5 + $0x10] sm:$0xff] %vm696_vm0, %v3057_v34  ;;  %732 = vst.msk [vmem:[#allocation5 + $0x18] sm:$0xff] %vm696_vm0, %v3057_v34 }
  0xc6   : > { %460 = vmatpush2.xpose.msra.mxu0 %v417_v39  ;;  %2531 = vmatpush2.xpose.msra.mxu1 %v417_v39  ;;  %733 = vst.msk [vmem:[#allocation5 + $0x20] sm:$0xff] %vm696_vm0, %v3057_v34  ;;  %734 = vst.msk [vmem:[#allocation5 + $0x28] sm:$0xff] %vm696_vm0, %v3057_v34 }
  0xc7   : > { %461 = vmatprep.subr.mxu0 %v416_v40  ;;  %2500 = vmatprep.subr.mxu1 %v416_v40  ;;  %735 = vst.msk [vmem:[#allocation5 + $0x30] sm:$0xff] %vm696_vm0, %v3057_v34  ;;  %736 = vst.msk [vmem:[#allocation5 + $0x38] sm:$0xff] %vm696_vm0, %v3057_v34 }
  0xc8   : > { %737 = vst.msk [vmem:[#allocation5 + $0x40] sm:$0xff] %vm696_vm0, %v3057_v34  ;;  %738 = vst.msk [vmem:[#allocation5 + $0x48] sm:$0xff] %vm696_vm0, %v3057_v34 }
  0xc9   : > { %739 = vst.msk [vmem:[#allocation5 + $0x50] sm:$0xff] %vm696_vm0, %v3057_v34  ;;  %740 = vst.msk [vmem:[#allocation5 + $0x58] sm:$0xff] %vm696_vm0, %v3057_v34 }
  0xca   : > { %462 = vmatpush2.xpose.msra.mxu0 %v415_v41  ;;  %2532 = vmatpush2.xpose.msra.mxu1 %v415_v41  ;;  %741 = vst.msk [vmem:[#allocation5 + $0x60] sm:$0xff] %vm696_vm0, %v3057_v34  ;;  %742 = vst.msk [vmem:[#allocation5 + $0x68] sm:$0xff] %vm696_vm0, %v3057_v34 }
  0xcb   : > { %463 = vmatprep.subr.mxu0 %v414_v42  ;;  %2501 = vmatprep.subr.mxu1 %v414_v42  ;;  %743 = vst.msk [vmem:[#allocation5 + $0x70] sm:$0xff] %vm696_vm0, %v3057_v34  ;;  %744 = vst.msk [vmem:[#allocation5 + $0x78] sm:$0xff] %vm696_vm0, %v3057_v34 }
  0xce   : > { %464 = vmatpush2.xpose.msra.mxu0 %v413_v43  ;;  %2533 = vmatpush2.xpose.msra.mxu1 %v413_v43 }
  0xcf   : > { %465 = vmatprep.subr.mxu0 %v412_v44  ;;  %2502 = vmatprep.subr.mxu1 %v412_v44 }
  0xd2   : > { %466 = vmatpush2.xpose.msra.mxu0 %v411_v45  ;;  %2534 = vmatpush2.xpose.msra.mxu1 %v411_v45 }
  0xd3   : > { %467 = vmatprep.subr.mxu0 %v410_v46  ;;  %2503 = vmatprep.subr.mxu1 %v410_v46 }
  0xd6   : > { %468 = vmatpush2.xpose.msra.mxu0 %v409_v47  ;;  %2535 = vmatpush2.xpose.msra.mxu1 %v409_v47 }
  0xd7   : > { %469 = vmatprep.subr.mxu0 %v408_v48  ;;  %2504 = vmatprep.subr.mxu1 %v408_v48 }
  0xda   : > { %470 = vmatpush2.xpose.msra.mxu0 %v407_v49  ;;  %2536 = vmatpush2.xpose.msra.mxu1 %v407_v49 }
  0xdb   : > { %471 = vmatprep.subr.mxu0 %v406_v50  ;;  %2505 = vmatprep.subr.mxu1 %v406_v50 }
  0xde   : > { %472 = vmatpush2.xpose.msra.mxu0 %v405_v51  ;;  %2537 = vmatpush2.xpose.msra.mxu1 %v405_v51 }
  0xdf   : > { %473 = vmatprep.subr.mxu0 %v404_v52  ;;  %2506 = vmatprep.subr.mxu1 %v404_v52 }
  0xe2   : > { %474 = vmatpush2.xpose.msra.mxu0 %v403_v53  ;;  %2538 = vmatpush2.xpose.msra.mxu1 %v403_v53 }
  0xe3   : > { %475 = vmatprep.subr.mxu0 %v402_v54  ;;  %2507 = vmatprep.subr.mxu1 %v402_v54 }
  0xe6   : > { %476 = vmatpush2.xpose.msra.mxu0 %v401_v55  ;;  %2539 = vmatpush2.xpose.msra.mxu1 %v401_v55 }
  0xe7   : > { %477 = vmatprep.subr.mxu0 %v400_v56  ;;  %2508 = vmatprep.subr.mxu1 %v400_v56 }
  0xea   : > { %478 = vmatpush2.xpose.msra.mxu0 %v399_v57  ;;  %2540 = vmatpush2.xpose.msra.mxu1 %v399_v57 }
  0xeb   : > { %479 = vmatprep.subr.mxu0 %v398_v58  ;;  %2509 = vmatprep.subr.mxu1 %v398_v58 }
  0xee   : > { %480 = vmatpush2.xpose.msra.mxu0 %v397_v59  ;;  %2541 = vmatpush2.xpose.msra.mxu1 %v397_v59 }
  0xef   : > { %481 = vmatprep.subr.mxu0 %v396_v60  ;;  %2510 = vmatprep.subr.mxu1 %v396_v60 }
  0xf2   : > { %482 = vmatpush2.xpose.msra.mxu0 %v395_v61  ;;  %2542 = vmatpush2.xpose.msra.mxu1 %v395_v61 }
  0xf3   : > { %483 = vmatprep.subr.mxu0 %v394_v62  ;;  %2511 = vmatprep.subr.mxu1 %v394_v62 }
  0xf6   : > { %484 = vmatpush2.xpose.msra.mxu0 %v393_v63  ;;  %2543 = vmatpush2.xpose.msra.mxu1 %v393_v63 }
  0xf7   : > { %485 = vmatprep.subr.mxu0 %v392_v0  ;;  %2512 = vmatprep.subr.mxu1 %v392_v0 }
  0xfa   : > { %486 = vmatpush2.xpose.msra.mxu0 %v391_v1  ;;  %2544 = vmatpush2.xpose.msra.mxu1 %v391_v1 }
  0xfd   : > { %488 = vmatmul.mubr.f32.vlgmr.msra.gmra.mxu0 %v3334_v2  ;;  %536 = vmatmul.mubr.f32.vlgmr.msra.gmra.mxu1 %v3337_v3 }
  0xfe   : > { %493 = vmatprep.mubr.f32.mxu0 %v3340_v4  ;;  %541 = vmatprep.mubr.f32.mxu1 %v3343_v5 }
 0x101   : > { %494 = vmatmul.mubr.f32.gmra.mxu0 %v3350_v6  ;;  %542 = vmatmul.mubr.f32.gmra.mxu1 %v3353_v7 }
 0x102   : > { %499 = vmatprep.mubr.f32.mxu0 %v3356_v8  ;;  %547 = vmatprep.mubr.f32.mxu1 %v3359_v9 }
 0x105   : > { %500 = vmatmul.mubr.f32.gmra.mxu0 %v3365_v10  ;;  %548 = vmatmul.mubr.f32.gmra.mxu1 %v3369_v11 }
 0x106   : > { %505 = vmatprep.mubr.f32.mxu0 %v3372_v12  ;;  %553 = vmatprep.mubr.f32.mxu1 %v3375_v15 }
 0x109   : > { %506 = vmatmul.mubr.f32.gmra.mxu0 %v3381_v16  ;;  %554 = vmatmul.mubr.f32.gmra.mxu1 %v3385_v17 }
 0x10a   : > { %511 = vmatprep.mubr.f32.mxu0 %v3388_v18  ;;  %559 = vmatprep.mubr.f32.mxu1 %v3391_v19 }
 0x10d   : > { %512 = vmatmul.mubr.f32.gmra.mxu0 %v3397_v20  ;;  %560 = vmatmul.mubr.f32.gmra.mxu1 %v3401_v21 }
 0x10e   : > { %517 = vmatprep.mubr.f32.mxu0 %v3404_v22  ;;  %565 = vmatprep.mubr.f32.mxu1 %v3407_v23 }
 0x111   : > { %518 = vmatmul.mubr.f32.gmra.mxu0 %v3413_v24  ;;  %566 = vmatmul.mubr.f32.gmra.mxu1 %v3417_v25 }
 0x112   : > { %523 = vmatprep.mubr.f32.mxu0 %v3420_v26  ;;  %571 = vmatprep.mubr.f32.mxu1 %v3423_v27 }
 0x115   : > { %524 = vmatmul.mubr.f32.gmra.mxu0 %v3429_v28  ;;  %572 = vmatmul.mubr.f32.gmra.mxu1 %v3433_v29 }
 0x116   : > { %529 = vmatprep.mubr.f32.mxu0 %v3436_v30  ;;  %577 = vmatprep.mubr.f32.mxu1 %v3439_v31 }
 0x119   : > { %530 = vmatmul.mubr.f32.gmra.mxu0 %v3445_v32  ;;  %578 = vmatmul.mubr.f32.gmra.mxu1 %v3449_v33 }
 0x1bd   : > { %v489_v35 = vpop.f32.mrf.mxu0  ;;  %v537_v36 = vpop.f32.mrf.mxu1 }
 0x1be   : > { %584 = vst [vmem:[#allocation2 + $0xb0] sm:$0xff] %v489_v35  ;;  %600 = vst [vmem:[#allocation2 + $0x38] sm:$0xff] %v537_v36  ;;  %v616_v39 = vmul.f32 %v489_v35, %v3334_v2  ;;  %v632_v47 = vmul.f32 %v537_v36, %v3337_v3 }
 0x1bf   : > { %v491_v37 = vpop.f32.mrf.mxu0  ;;  %v539_v38 = vpop.f32.mrf.mxu1 }
 0x1c0   : > { %585 = vst [vmem:[#allocation2] sm:$0xff] %v491_v37  ;;  %v617_v40 = vmul.f32 %v491_v37, %v3326_v13  ;;  %601 = vst [vmem:[#allocation2 + $0x58] sm:$0xff] %v539_v38  ;;  %v633_v43 = vmul.f32 %v539_v38, %v3329_v14 }
 0x1c1   : > { %v495_v41 = vpop.f32.mrf.mxu0  ;;  %v543_v42 = vpop.f32.mrf.mxu1 }
 0x1c2   : > { %586 = vst [vmem:[#allocation2 + $0xd8] sm:$0xff] %v495_v41  ;;  %602 = vst [vmem:[#allocation2 + $0x40] sm:$0xff] %v543_v42  ;;  %v648_v44 = vadd.f32 %v617_v40, %v616_v39  ;;  %v634_v48 = vmul.f32 %v543_v42, %v3353_v7  ;;  %v672_v52 = vadd.f32 %v633_v43, %v632_v47 }
 0x1c3   : > { %v497_v45 = vpop.f32.mrf.mxu0  ;;  %v545_v46 = vpop.f32.mrf.mxu1  ;;  %v618_v55 = vmul.f32 %v495_v41, %v3350_v6 }
 0x1c4   : > { %587 = vst [vmem:[#allocation2 + $0x18] sm:$0xff] %v497_v45  ;;  %603 = vst [vmem:[#allocation2 + $0xc8] sm:$0xff] %v545_v46  ;;  %v635_v49 = vmul.f32 %v545_v46, %v3343_v5  ;;  %649 = vadd.xlane.f32.xlu0 %v648_v44  ;;  %v619_v51 = vmul.f32 %v497_v45, %v3340_v4 }
 0x1c5   : > { %v501_v13 = vpop.f32.mrf.mxu0  ;;  %v549_v50 = vpop.f32.mrf.mxu1 }
 0x1c6   : > { %588 = vst [vmem:[#allocation2 + $0x50] sm:$0xff] %v501_v13  ;;  %604 = vst [vmem:[#allocation2 + $0xe0] sm:$0xff] %v549_v50  ;;  %v675_v14 = vadd.f32 %v635_v49, %v634_v48  ;;  %v620_v56 = vmul.f32 %v501_v13, %v3365_v10  ;;  %v636_v60 = vmul.f32 %v549_v50, %v3369_v11 }
 0x1c7   : > { %v503_v53 = vpop.f32.mrf.mxu0  ;;  %v551_v54 = vpop.f32.mrf.mxu1  ;;  %v651_v62 = vadd.f32 %v619_v51, %v618_v55 }
 0x1c8   : > { %589 = vst [vmem:[#allocation2 + $0x68] sm:$0xff] %v503_v53  ;;  %v621_v57 = vmul.f32 %v503_v53, %v3356_v8  ;;  %676 = vadd.xlane.f32.xlu1 %v675_v14  ;;  %673 = vadd.xlane.f32.xlu0 %v672_v52  ;;  %605 = vst [vmem:[#allocation2 + $0x90] sm:$0xff] %v551_v54  ;;  %v637_v61 = vmul.f32 %v551_v54, %v3359_v9 }
 0x1c9   : > { %v507_v58 = vpop.f32.mrf.mxu0  ;;  %v555_v59 = vpop.f32.mrf.mxu1 }
 0x1ca   : > { %590 = vst [vmem:[#allocation2 + $0x30] sm:$0xff] %v507_v58  ;;  %606 = vst [vmem:[#allocation2 + $0x70] sm:$0xff] %v555_v59  ;;  %v654_v63 = vadd.f32 %v621_v57, %v620_v56  ;;  %v622_v2 = vmul.f32 %v507_v58, %v3381_v16  ;;  %v638_v6 = vmul.f32 %v555_v59, %v3385_v17 }
 0x1cb   : > { %v509_v0 = vpop.f32.mrf.mxu0  ;;  %v557_v1 = vpop.f32.mrf.mxu1  ;;  %v678_v8 = vadd.f32 %v637_v61, %v636_v60 }
 0x1cc   : > { %591 = vst [vmem:[#allocation2 + $0x48] sm:$0xff] %v509_v0  ;;  %v623_v3 = vmul.f32 %v509_v0, %v3372_v12  ;;  %652 = vadd.xlane.f32.xlu0 %v651_v62  ;;  %655 = vadd.xlane.f32.xlu1 %v654_v63  ;;  %607 = vst [vmem:[#allocation2 + $0xc0] sm:$0xff] %v557_v1  ;;  %v639_v7 = vmul.f32 %v557_v1, %v3375_v15 }
 0x1cd   : > { %v513_v4 = vpop.f32.mrf.mxu0  ;;  %v561_v5 = vpop.f32.mrf.mxu1 }
 0x1ce   : > { %592 = vst [vmem:[#allocation2 + $0x80] sm:$0xff] %v513_v4  ;;  %608 = vst [vmem:[#allocation2 + $0xa8] sm:$0xff] %v561_v5  ;;  %v657_v9 = vadd.f32 %v623_v3, %v622_v2  ;;  %v624_v16 = vmul.f32 %v513_v4, %v3397_v20  ;;  %v640_v17 = vmul.f32 %v561_v5, %v3401_v21 }
 0x1cf   : > { %v515_v10 = vpop.f32.mrf.mxu0  ;;  %v563_v11 = vpop.f32.mrf.mxu1  ;;  %v681_v36 = vadd.f32 %v639_v7, %v638_v6 }
 0x1d0   : > { %593 = vst [vmem:[#allocation2 + $0x88] sm:$0xff] %v515_v10  ;;  %v625_v12 = vmul.f32 %v515_v10, %v3388_v18  ;;  %679 = vadd.xlane.f32.xlu0 %v678_v8  ;;  %658 = vadd.xlane.f32.xlu1 %v657_v9  ;;  %609 = vst [vmem:[#allocation2 + $0xd0] sm:$0xff] %v563_v11  ;;  %v641_v15 = vmul.f32 %v563_v11, %v3391_v19 }
 0x1d1   : > { %v519_v34 = vpop.f32.mrf.mxu0  ;;  %v567_v35 = vpop.f32.mrf.mxu1 }
 0x1d2   : > { %594 = vst [vmem:[#allocation2 + $0xe8] sm:$0xff] %v519_v34  ;;  %610 = vst [vmem:[#allocation2 + $0x10] sm:$0xff] %v567_v35  ;;  %v660_v37 = vadd.f32 %v625_v12, %v624_v16  ;;  %v626_v20 = vmul.f32 %v519_v34, %v3413_v24  ;;  %v642_v21 = vmul.f32 %v567_v35, %v3417_v25 }
 0x1d3   : > { %v521_v38 = vpop.f32.mrf.mxu0  ;;  %v569_v39 = vpop.f32.mrf.mxu1  ;;  %v684_v42 = vadd.f32 %v641_v15, %v640_v17 }
 0x1d4   : > { %595 = vst [vmem:[#allocation2 + $0xb8] sm:$0xff] %v521_v38  ;;  %v627_v18 = vmul.f32 %v521_v38, %v3404_v22  ;;  %682 = vadd.xlane.f32.xlu1 %v681_v36  ;;  %661 = vadd.xlane.f32.xlu0 %v660_v37  ;;  %611 = vst [vmem:[#allocation2 + $0x28] sm:$0xff] %v569_v39  ;;  %v643_v19 = vmul.f32 %v569_v39, %v3407_v23 }
 0x1d5   : > { %v525_v40 = vpop.f32.mrf.mxu0  ;;  %v573_v41 = vpop.f32.mrf.mxu1 }
 0x1d6   : > { %596 = vst [vmem:[#allocation2 + $0x60] sm:$0xff] %v525_v40  ;;  %612 = vst [vmem:[#allocation2 + $0xa0] sm:$0xff] %v573_v41  ;;  %v663_v43 = vadd.f32 %v627_v18, %v626_v20  ;;  %v628_v24 = vmul.f32 %v525_v40, %v3429_v28  ;;  %v644_v25 = vmul.f32 %v573_v41, %v3433_v29 }
 0x1d7   : > { %v527_v44 = vpop.f32.mrf.mxu0  ;;  %v575_v45 = vpop.f32.mrf.mxu1  ;;  %v687_v48 = vadd.f32 %v643_v19, %v642_v21 }
 0x1d8   : > { %597 = vst [vmem:[#allocation2 + $0xf0] sm:$0xff] %v527_v44  ;;  %v629_v22 = vmul.f32 %v527_v44, %v3420_v26  ;;  %685 = vadd.xlane.f32.xlu0 %v684_v42  ;;  %664 = vadd.xlane.f32.xlu1 %v663_v43  ;;  %613 = vst [vmem:[#allocation2 + $0xf8] sm:$0xff] %v575_v45  ;;  %v645_v23 = vmul.f32 %v575_v45, %v3423_v27 }
 0x1d9   : > { %v531_v46 = vpop.f32.mrf.mxu0  ;;  %v579_v47 = vpop.f32.mrf.mxu1 }
 0x1da   : > { %598 = vst [vmem:[#allocation2 + $0x8] sm:$0xff] %v531_v46  ;;  %614 = vst [vmem:[#allocation2 + $0x20] sm:$0xff] %v579_v47  ;;  %v666_v49 = vadd.f32 %v629_v22, %v628_v24  ;;  %v630_v28 = vmul.f32 %v531_v46, %v3445_v32  ;;  %v646_v51 = vmul.f32 %v579_v47, %v3449_v33 }
 0x1db   : > { %v533_v13 = vpop.f32.mrf.mxu0  ;;  %v581_v50 = vpop.f32.mrf.mxu1  ;;  %v690_v14 = vadd.f32 %v645_v23, %v644_v25 }
 0x1dc   : > { %599 = vst [vmem:[#allocation2 + $0x78] sm:$0xff] %v533_v13  ;;  %v631_v26 = vmul.f32 %v533_v13, %v3436_v30  ;;  %688 = vadd.xlane.f32.xlu1 %v687_v48  ;;  %667 = vadd.xlane.f32.xlu0 %v666_v49  ;;  %615 = vst [vmem:[#allocation2 + $0x98] sm:$0xff] %v581_v50  ;;  %v647_v29 = vmul.f32 %v581_v50, %v3439_v31 }
 0x1de   : > { %v669_v52 = vadd.f32 %v631_v26, %v630_v28  ;;  %v693_v27 = vadd.f32 %v647_v29, %v646_v51 }
 0x1e0   : > { %691 = vadd.xlane.f32.xlu0 %v690_v14  ;;  %670 = vadd.xlane.f32.xlu1 %v669_v52 }
 0x1e4   : > { %694 = vadd.xlane.f32.xlu1 %v693_v27 }
 0x24d   : > { %v650_v53 = vpop.xlane.xlu0 %649 }
 0x24e   : > { %697 = vst.msk [vmem:[#allocation3] sm:$0xff] %vm696_vm0, %v650_v53 }
 0x251   : > { %v677_v32 = vpop.xlane.xlu1 %676  ;;  %v674_v54 = vpop.xlane.xlu0 %673 }
 0x252   : > { %706 = vst.msk [vmem:[#allocation3 + $0x48] sm:$0xff] %vm696_vm0, %v677_v32  ;;  %705 = vst.msk [vmem:[#allocation3 + $0x40] sm:$0xff] %vm696_vm0, %v674_v54 }
 0x255   : > { %v653_v30 = vpop.xlane.xlu0 %652  ;;  %v656_v55 = vpop.xlane.xlu1 %655 }
 0x256   : > { %698 = vst.msk [vmem:[#allocation3 + $0x8] sm:$0xff] %vm696_vm0, %v653_v30  ;;  %699 = vst.msk [vmem:[#allocation3 + $0x10] sm:$0xff] %vm696_vm0, %v656_v55 }
 0x259   : > { %v680_v31 = vpop.xlane.xlu0 %679  ;;  %v659_v33 = vpop.xlane.xlu1 %658 }
 0x25a   : > { %707 = vst.msk [vmem:[#allocation3 + $0x50] sm:$0xff] %vm696_vm0, %v680_v31  ;;  %700 = vst.msk [vmem:[#allocation3 + $0x18] sm:$0xff] %vm696_vm0, %v659_v33 }
 0x25d   : > { %v683_v56 = vpop.xlane.xlu1 %682  ;;  %v662_v57 = vpop.xlane.xlu0 %661 }
 0x25e   : > { %708 = vst.msk [vmem:[#allocation3 + $0x58] sm:$0xff] %vm696_vm0, %v683_v56  ;;  %701 = vst.msk [vmem:[#allocation3 + $0x20] sm:$0xff] %vm696_vm0, %v662_v57 }
 0x261   : > { %v686_v58 = vpop.xlane.xlu0 %685  ;;  %v665_v59 = vpop.xlane.xlu1 %664 }
 0x262   : > { %709 = vst.msk [vmem:[#allocation3 + $0x60] sm:$0xff] %vm696_vm0, %v686_v58  ;;  %702 = vst.msk [vmem:[#allocation3 + $0x28] sm:$0xff] %vm696_vm0, %v665_v59 }
 0x265   : > { %v689_v60 = vpop.xlane.xlu1 %688  ;;  %v668_v61 = vpop.xlane.xlu0 %667 }
 0x266   : > { %710 = vst.msk [vmem:[#allocation3 + $0x68] sm:$0xff] %vm696_vm0, %v689_v60  ;;  %703 = vst.msk [vmem:[#allocation3 + $0x30] sm:$0xff] %vm696_vm0, %v668_v61 }
 0x269   : > { %v692_v62 = vpop.xlane.xlu0 %691  ;;  %v671_v63 = vpop.xlane.xlu1 %670 }
 0x26a   : > { %711 = vst.msk [vmem:[#allocation3 + $0x70] sm:$0xff] %vm696_vm0, %v692_v62  ;;  %704 = vst.msk [vmem:[#allocation3 + $0x38] sm:$0xff] %vm696_vm0, %v671_v63 }
 0x26d   : > { %v695_v0 = vpop.xlane.xlu1 %694 }
 0x26e   : > { %712 = vst.msk [vmem:[#allocation3 + $0x78] sm:$0xff] %vm696_vm0, %v695_v0 }
 0x26f PF: > { %v808_v1 = vld [vmem:[#allocation9 + $0xf8] sm:$0xff]  ;;  %v807_v2 = vld [vmem:[#allocation9 + $0xf0] sm:$0xff]  ;;  %v806_v3 = vld [vmem:[#allocation9 + $0xe8] sm:$0xff]  ;;  %v3058_v12 = vmov 0   ;;  %vm1414_vm1 = vcmask 130112   ;;  %vm1421_vm2 = vcmask 195712  }
 0x270   : > { %841 = vmatprep.subr.mxu0 %v808_v1  ;;  %v805_v4 = vld [vmem:[#allocation9 + $0xe0] sm:$0xff]  ;;  %v804_v5 = vld [vmem:[#allocation9 + $0xd8] sm:$0xff]  ;;  %v803_v6 = vld [vmem:[#allocation9 + $0xd0] sm:$0xff]  ;;  %2710 = vset.pattern.permute.xlu1 %v3058_v12  ;;  %vm1428_vm3 = vcmask 261312   ;;  %vm1435_vm4 = vcmask 326912   ;;  %vm1442_vm5 = vcmask 392512  }
 0x271   : > { %842 = vmatpush1.msra.mxu0 %v807_v2  ;;  %v802_v7 = vld [vmem:[#allocation9 + $0xc8] sm:$0xff]  ;;  %v801_v8 = vld [vmem:[#allocation9 + $0xc0] sm:$0xff]  ;;  %v800_v9 = vld [vmem:[#allocation9 + $0xb8] sm:$0xff]  ;;  %2709 = vset.pattern.permute.xlu0 %v3058_v12  ;;  %vm1449_vm6 = vcmask 458112   ;;  %vm1456_vm7 = vcmask 523712   ;;  %vm1463_vm8 = vcmask 589312  }
 0x272   : > { %843 = vmatprep.subr.mxu0 %v806_v3  ;;  %v799_v10 = vld [vmem:[#allocation9 + $0xb0] sm:$0xff]  ;;  %v798_v11 = vld [vmem:[#allocation9 + $0xa8] sm:$0xff]  ;;  %v797_v16 = vld [vmem:[#allocation9 + $0xa0] sm:$0xff]  ;;  %vm1470_vm9 = vcmask 654912   ;;  %vm1477_vm10 = vcmask 720512   ;;  %vm1484_vm11 = vcmask 786112  }
 0x273   : > { %844 = vmatpush1.msra.mxu0 %v805_v4  ;;  %v796_v34 = vld [vmem:[#allocation9 + $0x98] sm:$0xff]  ;;  %v795_v35 = vld [vmem:[#allocation9 + $0x90] sm:$0xff]  ;;  %v794_v17 = vld [vmem:[#allocation9 + $0x88] sm:$0xff]  ;;  %vm1491_vm12 = vcmask 851712   ;;  %vm1498_vm13 = vcmask 917312   ;;  %vm1505_vm14 = vcmask 982912  }
 0x274   : > { %845 = vmatprep.subr.mxu0 %v804_v5  ;;  %v793_v15 = vld [vmem:[#allocation9 + $0x80] sm:$0xff]  ;;  %v792_v36 = vld [vmem:[#allocation9 + $0x78] sm:$0xff]  ;;  %v791_v37 = vld [vmem:[#allocation9 + $0x70] sm:$0xff]  ;;  %vm1512_vm15 = vcmask 1048512   ;;  %s2364_s11 = sshll.u32 %s3031_s21, 7  ;;  %p2381_p4 = scmp.ne.s32.totalorder %s3031_s21, 2 }
 0x275   : > { %846 = vmatpush1.msra.mxu0 %v803_v6  ;;  %v3518_v38 = vld [vmem:[%s3313_s12 + $0xf8] sm:$0xff]  ;;  %v3521_v39 = vld [vmem:[%s3313_s12 + $0xf0] sm:$0xff]  ;;  %v790_v20 = vld [vmem:[#allocation9 + $0x68] sm:$0xff] }
 0x276   : > { %847 = vmatprep.subr.mxu0 %v802_v7  ;;  %1114 = vmatprep.subr.mxu1 %v3518_v38  ;;  %v789_v18 = vld [vmem:[#allocation9 + $0x60] sm:$0xff]  ;;  %v3526_v40 = vld [vmem:[%s3313_s12 + $0xe8] sm:$0xff]  ;;  %v788_v41 = vld [vmem:[#allocation9 + $0x58] sm:$0xff] }
 0x277   : > { %848 = vmatpush1.msra.mxu0 %v801_v8  ;;  %1115 = vmatpush1.xpose.msra.mxu1 %v3521_v39  ;;  %v3530_v21 = vld [vmem:[%s3313_s12 + $0xe0] sm:$0xff]  ;;  %v787_v19 = vld [vmem:[#allocation9 + $0x50] sm:$0xff]  ;;  %v3533_v42 = vld [vmem:[%s3313_s12 + $0xd8] sm:$0xff] }
 0x278   : > { %849 = vmatprep.subr.mxu0 %v800_v9  ;;  %1116 = vmatprep.subr.mxu1 %v3526_v40  ;;  %v786_v43 = vld [vmem:[#allocation9 + $0x48] sm:$0xff]  ;;  %v785_v44 = vld [vmem:[#allocation9 + $0x40] sm:$0xff]  ;;  %v784_v45 = vld [vmem:[#allocation9 + $0x38] sm:$0xff] }
 0x279   : > { %850 = vmatpush1.msra.mxu0 %v799_v10  ;;  %v3538_v24 = vld [vmem:[%s3313_s12 + $0xd0] sm:$0xff]  ;;  %v3541_v46 = vld [vmem:[%s3313_s12 + $0xc8] sm:$0xff]  ;;  %v781_v23 = vld [vmem:[#allocation9 + $0x20] sm:$0xff] }
 0x27a   : > { %851 = vmatprep.subr.mxu0 %v798_v11  ;;  %v783_v22 = vld [vmem:[#allocation9 + $0x30] sm:$0xff]  ;;  %v782_v47 = vld [vmem:[#allocation9 + $0x28] sm:$0xff]  ;;  %v780_v48 = vld [vmem:[#allocation9 + $0x18] sm:$0xff] }
 0x27b   : > { %852 = vmatpush1.msra.mxu0 %v797_v16  ;;  %1117 = vmatpush1.xpose.msra.mxu1 %v3530_v21  ;;  %v3544_v25 = vld [vmem:[%s3313_s12 + $0x8] sm:$0xff]  ;;  %v3549_v49 = vld [vmem:[%s3313_s12 + $0xc0] sm:$0xff]  ;;  %v779_v13 = vld [vmem:[#allocation9 + $0x10] sm:$0xff] }
 0x27c   : > { %853 = vmatprep.subr.mxu0 %v796_v34  ;;  %1118 = vmatprep.subr.mxu1 %v3533_v42  ;;  %v3552_v50 = vld [vmem:[%s3313_s12 + $0xb8] sm:$0xff]  ;;  %v778_v28 = vld [vmem:[#allocation9 + $0x8] sm:$0xff]  ;;  %v777_v26 = vld [vmem:[#allocation9] sm:$0xff] }
 0x27d   : > { %854 = vmatpush1.msra.mxu0 %v795_v35  ;;  %905 = vmatprep.mubr.f32.mxu0 %v3544_v25  ;;  %v840_v51 = vld [vmem:[#allocation9 + $0x1f8] sm:$0xff]  ;;  %v3558_v29 = vld [vmem:[%s3313_s12 + $0xb0] sm:$0xff]  ;;  %v3561_v52 = vld [vmem:[%s3313_s12 + $0xa8] sm:$0xff] }
 0x27e   : > { %855 = vmatprep.subr.mxu0 %v794_v17  ;;  %v839_v14 = vld [vmem:[#allocation9 + $0x1f0] sm:$0xff]  ;;  %v838_v27 = vld [vmem:[#allocation9 + $0x1e8] sm:$0xff]  ;;  %v1083_v53 = vld [vmem:[#allocation2] sm:$0xff] }
 0x27f   : > { %856 = vmatpush1.msra.mxu0 %v793_v15  ;;  %1119 = vmatpush1.xpose.msra.mxu1 %v3538_v24  ;;  %v837_v32 = vld [vmem:[#allocation9 + $0x1e0] sm:$0xff]  ;;  %v836_v54 = vld [vmem:[#allocation9 + $0x1d8] sm:$0xff]  ;;  %v835_v55 = vld [vmem:[#allocation9 + $0x1d0] sm:$0xff] }
 0x280   : > { %857 = vmatprep.subr.mxu0 %v792_v36  ;;  %1120 = vmatprep.subr.mxu1 %v3541_v46  ;;  %v3566_v30 = vld [vmem:[%s3313_s12 + $0xa0] sm:$0xff]  ;;  %v3569_v31 = vld [vmem:[%s3313_s12 + $0x98] sm:$0xff]  ;;  %v834_v33 = vld [vmem:[#allocation9 + $0x1c8] sm:$0xff] }
 0x281   : > { %858 = vmatpush1.msra.mxu0 %v791_v37  ;;  %1178 = vmatprep.mubr.f32.mxu1 %v1083_v53  ;;  %v833_v56 = vld [vmem:[#allocation9 + $0x1c0] sm:$0xff]  ;;  %v832_v57 = vld [vmem:[#allocation9 + $0x1b8] sm:$0xff]  ;;  %v3574_v58 = vld [vmem:[%s3313_s12 + $0x90] sm:$0xff] }
 0x282   : > { %859 = vmatprep.subr.mxu0 %v790_v20  ;;  %v831_v59 = vld [vmem:[#allocation9 + $0x1b0] sm:$0xff]  ;;  %v3577_v60 = vld [vmem:[%s3313_s12 + $0x88] sm:$0xff]  ;;  %v829_v62 = vld [vmem:[#allocation9 + $0x1a0] sm:$0xff] }
 0x283   : > { %860 = vmatpush1.msra.mxu0 %v789_v18  ;;  %1121 = vmatpush1.xpose.msra.mxu1 %v3549_v49  ;;  %v830_v61 = vld [vmem:[#allocation9 + $0x1a8] sm:$0xff]  ;;  %v828_v63 = vld [vmem:[#allocation9 + $0x198] sm:$0xff]  ;;  %v3582_v0 = vld [vmem:[%s3313_s12 + $0x80] sm:$0xff] }
 0x284   : > { %861 = vmatprep.subr.mxu0 %v788_v41  ;;  %1122 = vmatprep.subr.mxu1 %v3552_v50  ;;  %v1267_v1 = vld [vmem:[#allocation3 + $0x40] sm:$0xff]  ;;  %v827_v2 = vld [vmem:[#allocation9 + $0x190] sm:$0xff]  ;;  %v3585_v3 = vld [vmem:[%s3313_s12 + $0x78] sm:$0xff] }
 0x285   : > { %862 = vmatpush1.msra.mxu0 %v787_v19  ;;  %1333 = vperm.xlu1 %2710, %v1267_v1   ;;  %v826_v4 = vld [vmem:[#allocation9 + $0x188] sm:$0xff]  ;;  %v825_v6 = vld [vmem:[#allocation9 + $0x180] sm:$0xff]  ;;  %v824_v8 = vld [vmem:[#allocation9 + $0x178] sm:$0xff] }
 0x286   : > { %863 = vmatprep.subr.mxu0 %v786_v43  ;;  %v1260_v5 = vld [vmem:[#allocation3 + $0x8] sm:$0xff]  ;;  %v1259_v7 = vld [vmem:[#allocation3] sm:$0xff]  ;;  %v3590_v9 = vld [vmem:[%s3313_s12 + $0x70] sm:$0xff] }
 0x287   : > { %864 = vmatpush1.msra.mxu0 %v785_v44  ;;  %1123 = vmatpush1.xpose.msra.mxu1 %v3558_v29  ;;  %v823_v10 = vld [vmem:[#allocation9 + $0x170] sm:$0xff]  ;;  %v3593_v11 = vld [vmem:[%s3313_s12 + $0x68] sm:$0xff]  ;;  %v821_v34 = vld [vmem:[#allocation9 + $0x160] sm:$0xff] }
 0x288   : > { %865 = vmatprep.subr.mxu0 %v784_v45  ;;  %1124 = vmatprep.subr.mxu1 %v3561_v52  ;;  %v822_v16 = vld [vmem:[#allocation9 + $0x168] sm:$0xff]  ;;  %v1271_v35 = vld [vmem:[#allocation3 + $0x60] sm:$0xff]  ;;  %v820_v17 = vld [vmem:[#allocation9 + $0x158] sm:$0xff] }
 0x289   : > { %866 = vmatpush1.msra.mxu0 %v783_v22  ;;  %1298 = vperm.xlu1 %2710, %v1260_v5   ;;  %v1268_v12 = vld [vmem:[#allocation3 + $0x48] sm:$0xff]  ;;  %v3598_v15 = vld [vmem:[%s3313_s12 + $0x60] sm:$0xff]  ;;  %v819_v36 = vld [vmem:[#allocation9 + $0x150] sm:$0xff] }
 0x28a   : > { %867 = vmatprep.subr.mxu0 %v782_v47  ;;  %1293 = vperm.xlu0 %2709, %v1259_v7   ;;  %v3601_v37 = vld [vmem:[%s3313_s12 + $0x58] sm:$0xff]  ;;  %v818_v20 = vld [vmem:[#allocation9 + $0x148] sm:$0xff]  ;;  %v1261_v18 = vld [vmem:[#allocation3 + $0x10] sm:$0xff] }
 0x28b   : > { %868 = vmatpush1.msra.mxu0 %v781_v23  ;;  %1125 = vmatpush1.xpose.msra.mxu1 %v3566_v30  ;;  %v817_v41 = vld [vmem:[#allocation9 + $0x140] sm:$0xff]  ;;  %v1272_v19 = vld [vmem:[#allocation3 + $0x68] sm:$0xff]  ;;  %v816_v43 = vld [vmem:[#allocation9 + $0x138] sm:$0xff] }
 0x28c   : > { %869 = vmatprep.subr.mxu0 %v780_v48  ;;  %1126 = vmatprep.subr.mxu1 %v3569_v31  ;;  %v3605_v44 = vld [vmem:[%s3313_s12 + $0x50] sm:$0xff]  ;;  %v814_v22 = vld [vmem:[#allocation9 + $0x128] sm:$0xff]  ;;  %v813_v23 = vld [vmem:[#allocation9 + $0x120] sm:$0xff] }
 0x28d   : > { %870 = vmatpush1.msra.mxu0 %v779_v13  ;;  %1338 = vperm.xlu1 %2710, %v1268_v12   ;;  %v815_v45 = vld [vmem:[#allocation9 + $0x130] sm:$0xff]  ;;  %v3609_v48 = vld [vmem:[%s3313_s12 + $0x48] sm:$0xff]  ;;  %v809_v53 = vld [vmem:[#allocation9 + $0x100] sm:$0xff] }
 0x28e   : > { %871 = vmatprep.subr.mxu0 %v778_v28  ;;  %1353 = vperm.xlu0 %2709, %v1271_v35   ;;  %v1269_v47 = vld [vmem:[#allocation3 + $0x50] sm:$0xff]  ;;  %v812_v28 = vld [vmem:[#allocation9 + $0x118] sm:$0xff]  ;;  %v1090_v12 = vld [vmem:[#allocation2 + $0x80] sm:$0xff] }
 0x28f   : > { %872 = vmatpush1.msra.mxu0 %v777_v26  ;;  %1127 = vmatpush1.xpose.msra.mxu1 %v3574_v58  ;;  %v1273_v13 = vld [vmem:[#allocation3 + $0x70] sm:$0xff]  ;;  %v1084_v5 = vld [vmem:[#allocation2 + $0xd8] sm:$0xff]  ;;  %v1092_v35 = vld [vmem:[#allocation2 + $0xe8] sm:$0xff] }
 0x290   : > { %873 = vmatprep.subr.mxu0 %v840_v51  ;;  %1128 = vmatprep.subr.mxu1 %v3577_v60  ;;  %v811_v26 = vld [vmem:[#allocation9 + $0x110] sm:$0xff]  ;;  %v810_v51 = vld [vmem:[#allocation9 + $0x108] sm:$0xff] }
 0x291   : > { %874 = vmatpush2.msra.mxu0 %v839_v14  ;;  %1303 = vperm.xlu1 %2710, %v1261_v18   ;;  %v3614_v14 = vld [vmem:[%s3313_s12 + $0x40] sm:$0xff]  ;;  %v1265_v1 = vld [vmem:[#allocation3 + $0x30] sm:$0xff]  ;;  %v1096_v18 = vld [vmem:[#allocation2 + $0x8] sm:$0xff] }
 0x292   : > { %875 = vmatprep.subr.mxu0 %v838_v27  ;;  %1358 = vperm.xlu0 %2709, %v1272_v19   ;;  %v1262_v27 = vld [vmem:[#allocation3 + $0x18] sm:$0xff]  ;;  %v1086_v7 = vld [vmem:[#allocation2 + $0x50] sm:$0xff] }
 0x293   : > { %876 = vmatpush2.msra.mxu0 %v837_v32  ;;  %1129 = vmatpush1.xpose.msra.mxu1 %v3582_v0  ;;  %v3617_v32 = vld [vmem:[%s3313_s12 + $0x38] sm:$0xff] }
 0x294   : > { %877 = vmatprep.subr.mxu0 %v836_v54  ;;  %1130 = vmatprep.subr.mxu1 %v3585_v3  ;;  %v3621_v54 = vld [vmem:[%s3313_s12] sm:$0xff]  ;;  %v1098_v19 = vld [vmem:[#allocation2 + $0x38] sm:$0xff] }
 0x295   : > { %878 = vmatpush2.msra.mxu0 %v835_v55  ;;  %1343 = vperm.xlu1 %2710, %v1269_v47   ;;  %v3625_v55 = vld [vmem:[%s3313_s12 + $0x18] sm:$0xff]  ;;  %v1102_v47 = vld [vmem:[#allocation2 + $0xe0] sm:$0xff] }
 0x296   : > { %879 = vmatprep.subr.mxu0 %v834_v33  ;;  %1363 = vperm.xlu0 %2709, %v1273_v13   ;;  %v3628_v33 = vld [vmem:[%s3313_s12 + $0x30] sm:$0xff] }
 0x297   : > { %880 = vmatpush2.msra.mxu0 %v833_v56  ;;  %1131 = vmatpush1.xpose.msra.mxu1 %v3590_v9  ;;  %v1270_v56 = vld [vmem:[#allocation3 + $0x58] sm:$0xff]  ;;  %v1104_v13 = vld [vmem:[#allocation2 + $0x70] sm:$0xff] }
 0x298   : > { %881 = vmatprep.subr.mxu0 %v832_v57  ;;  %1132 = vmatprep.subr.mxu1 %v3593_v11  ;;  %v3632_v57 = vld [vmem:[%s3313_s12 + $0x28] sm:$0xff] }
 0x299   : > { %882 = vmatpush2.msra.mxu0 %v831_v59  ;;  %1308 = vperm.xlu1 %2710, %v1262_v27   ;;  %v3637_v59 = vld [vmem:[%s3313_s12 + $0x10] sm:$0xff] }
 0x29a   : > { %883 = vmatprep.subr.mxu0 %v830_v61  ;;  %v3641_v61 = vld [vmem:[%s3313_s12 + $0x20] sm:$0xff]  ;;  %v1108_v27 = vld [vmem:[#allocation2 + $0x10] sm:$0xff] }
 0x29b   : > { %884 = vmatpush2.msra.mxu0 %v829_v62  ;;  %1133 = vmatpush1.xpose.msra.mxu1 %v3598_v15  ;;  %v1263_v62 = vld [vmem:[#allocation3 + $0x20] sm:$0xff] }
 0x29c   : > { %885 = vmatprep.subr.mxu0 %v828_v63  ;;  %1134 = vmatprep.subr.mxu1 %v3601_v37  ;;  %v1264_v63 = vld [vmem:[#allocation3 + $0x28] sm:$0xff] }
 0x29d   : > { %886 = vmatpush2.msra.mxu0 %v827_v2  ;;  %1348 = vperm.xlu1 %2710, %v1270_v56   ;;  %v1082_v2 = vld [vmem:[#allocation2 + $0xb0] sm:$0xff]  ;;  %v1110_v56 = vld [vmem:[#allocation2 + $0xa0] sm:$0xff] }
 0x29e   : > { %887 = vmatprep.subr.mxu0 %v826_v4  ;;  %v1085_v4 = vld [vmem:[#allocation2 + $0x18] sm:$0xff] }
 0x29f   : > { %888 = vmatpush2.msra.mxu0 %v825_v6  ;;  %1135 = vmatpush1.xpose.msra.mxu1 %v3605_v44  ;;  %v1087_v6 = vld [vmem:[#allocation2 + $0x68] sm:$0xff] }
 0x2a0   : > { %889 = vmatprep.subr.mxu0 %v824_v8  ;;  %1136 = vmatprep.subr.mxu1 %v3609_v48  ;;  %v1089_v8 = vld [vmem:[#allocation2 + $0x48] sm:$0xff] }
 0x2a1   : > { %890 = vmatpush2.msra.mxu0 %v823_v10  ;;  %1313 = vperm.xlu1 %2710, %v1263_v62   ;;  %v1088_v10 = vld [vmem:[#allocation2 + $0x30] sm:$0xff]  ;;  %v1113_v62 = vld [vmem:[#allocation2 + $0x98] sm:$0xff] }
 0x2a2   : > { %891 = vmatprep.subr.mxu0 %v822_v16  ;;  %v1091_v16 = vld [vmem:[#allocation2 + $0x88] sm:$0xff] }
 0x2a3   : > { %892 = vmatpush2.msra.mxu0 %v821_v34  ;;  %1137 = vmatpush1.xpose.msra.mxu1 %v3614_v14  ;;  %v1093_v34 = vld [vmem:[#allocation2 + $0xb8] sm:$0xff] }
 0x2a4   : > { %893 = vmatprep.subr.mxu0 %v820_v17  ;;  %1138 = vmatprep.subr.mxu1 %v3617_v32  ;;  %v1095_v17 = vld [vmem:[#allocation2 + $0xf0] sm:$0xff] }
 0x2a5   : > { %894 = vmatpush2.msra.mxu0 %v819_v36  ;;  %1318 = vperm.xlu1 %2710, %v1264_v63   ;;  %v1094_v36 = vld [vmem:[#allocation2 + $0x60] sm:$0xff] }
 0x2a6   : > { %895 = vmatprep.subr.mxu0 %v818_v20  ;;  %v1097_v20 = vld [vmem:[#allocation2 + $0x78] sm:$0xff]  ;;  %v1112_v63 = vld [vmem:[#allocation2 + $0x20] sm:$0xff] }
 0x2a7   : > { %896 = vmatpush2.msra.mxu0 %v817_v41  ;;  %1139 = vmatpush1.xpose.msra.mxu1 %v3628_v33  ;;  %v1099_v41 = vld [vmem:[#allocation2 + $0x58] sm:$0xff] }
 0x2a8   : > { %897 = vmatprep.subr.mxu0 %v816_v43  ;;  %1140 = vmatprep.subr.mxu1 %v3632_v57  ;;  %v1101_v43 = vld [vmem:[#allocation2 + $0xc8] sm:$0xff] }
 0x2a9   : > { %898 = vmatpush2.msra.mxu0 %v815_v45  ;;  %1323 = vperm.xlu1 %2710, %v1265_v1   ;;  %v1100_v45 = vld [vmem:[#allocation2 + $0x40] sm:$0xff] }
 0x2aa   : > { %899 = vmatprep.subr.mxu0 %v814_v22  ;;  %v1103_v22 = vld [vmem:[#allocation2 + $0x90] sm:$0xff] }
 0x2ab   : > { %900 = vmatpush2.msra.mxu0 %v813_v23  ;;  %1141 = vmatpush1.xpose.msra.mxu1 %v3641_v61  ;;  %v1105_v23 = vld [vmem:[#allocation2 + $0xc0] sm:$0xff] }
 0x2ac   : > { %901 = vmatprep.subr.mxu0 %v812_v28  ;;  %1142 = vmatprep.subr.mxu1 %v3625_v55  ;;  %v1107_v28 = vld [vmem:[#allocation2 + $0xd0] sm:$0xff] }
 0x2ad   : > { %902 = vmatpush2.msra.mxu0 %v811_v26  ;;  %v1106_v26 = vld [vmem:[#allocation2 + $0xa8] sm:$0xff] }
 0x2ae   : > { %903 = vmatprep.subr.mxu0 %v810_v51  ;;  %v1109_v51 = vld [vmem:[#allocation2 + $0x28] sm:$0xff] }
 0x2af   : > { %904 = vmatpush2.msra.mxu0 %v809_v53  ;;  %1143 = vmatpush1.xpose.msra.mxu1 %v3637_v59  ;;  %v1111_v53 = vld [vmem:[#allocation2 + $0xf8] sm:$0xff] }
 0x2b0   : > { %906 = vmatmul.mubr.f32.vlgmr.msra.gmra.mxu0 %v3621_v54  ;;  %1144 = vmatprep.subr.mxu1 %v3544_v25 }
 0x2b1   : > { %911 = vmatprep.mubr.f32.mxu0 %v3625_v55 }
 0x2b3   : > { %1145 = vmatpush1.xpose.msra.mxu1 %v3621_v54 }
 0x2b4   : > { %912 = vmatmul.mubr.f32.gmra.mxu0 %v3637_v59 }
 0x2b5   : > { %917 = vmatprep.mubr.f32.mxu0 %v3632_v57 }
 0x2b6   : > { %1179 = vmatmul.mubr.f32.vlgmr.msra.gmra.mxu1 %v1082_v2 }
 0x2b7   : > { %1183 = vmatprep.mubr.f32.mxu1 %v1085_v4 }
 0x2b8   : > { %918 = vmatmul.mubr.f32.gmra.mxu0 %v3641_v61 }
 0x2b9   : > { %923 = vmatprep.mubr.f32.mxu0 %v3617_v32 }
 0x2ba   : > { %1184 = vmatmul.mubr.f32.gmra.mxu1 %v1084_v5 }
 0x2bb   : > { %1188 = vmatprep.mubr.f32.mxu1 %v1087_v6 }
 0x2bc   : > { %924 = vmatmul.mubr.f32.gmra.mxu0 %v3628_v33 }
 0x2bd   : > { %929 = vmatprep.mubr.f32.mxu0 %v3609_v48 }
 0x2be   : > { %1189 = vmatmul.mubr.f32.gmra.mxu1 %v1086_v7 }
 0x2bf   : > { %1193 = vmatprep.mubr.f32.mxu1 %v1089_v8 }
 0x2c0   : > { %930 = vmatmul.mubr.f32.gmra.mxu0 %v3614_v14 }
 0x2c1   : > { %935 = vmatprep.mubr.f32.mxu0 %v3601_v37 }
 0x2c2   : > { %1194 = vmatmul.mubr.f32.gmra.mxu1 %v1088_v10 }
 0x2c3   : > { %1198 = vmatprep.mubr.f32.mxu1 %v1091_v16 }
 0x2c4   : > { %936 = vmatmul.mubr.f32.gmra.mxu0 %v3605_v44 }
 0x2c5   : > { %941 = vmatprep.mubr.f32.mxu0 %v3593_v11 }
 0x2c6   : > { %1199 = vmatmul.mubr.f32.gmra.mxu1 %v1090_v12 }
 0x2c7   : > { %1203 = vmatprep.mubr.f32.mxu1 %v1093_v34 }
 0x2c8   : > { %942 = vmatmul.mubr.f32.gmra.mxu0 %v3598_v15 }
 0x2c9   : > { %947 = vmatprep.mubr.f32.mxu0 %v3585_v3 }
 0x2ca   : > { %1204 = vmatmul.mubr.f32.gmra.mxu1 %v1092_v35 }
 0x2cb   : > { %1208 = vmatprep.mubr.f32.mxu1 %v1095_v17 }
 0x2cc   : > { %948 = vmatmul.mubr.f32.gmra.mxu0 %v3590_v9 }
 0x2cd   : > { %953 = vmatprep.mubr.f32.mxu0 %v3577_v60 }
 0x2ce   : > { %1209 = vmatmul.mubr.f32.gmra.mxu1 %v1094_v36 }
 0x2cf   : > { %1213 = vmatprep.mubr.f32.mxu1 %v1097_v20 }
 0x2d0   : > { %954 = vmatmul.mubr.f32.gmra.mxu0 %v3582_v0 }
 0x2d1   : > { %959 = vmatprep.mubr.f32.mxu0 %v3569_v31 }
 0x2d2   : > { %1214 = vmatmul.mubr.f32.gmra.mxu1 %v1096_v18 }
 0x2d3   : > { %1218 = vmatprep.mubr.f32.mxu1 %v1099_v41 }
 0x2d4   : > { %960 = vmatmul.mubr.f32.gmra.mxu0 %v3574_v58 }
 0x2d5   : > { %965 = vmatprep.mubr.f32.mxu0 %v3561_v52 }
 0x2d6   : > { %1219 = vmatmul.mubr.f32.gmra.mxu1 %v1098_v19 }
 0x2d7   : > { %1223 = vmatprep.mubr.f32.mxu1 %v1101_v43 }
 0x2d8   : > { %966 = vmatmul.mubr.f32.gmra.mxu0 %v3566_v30 }
 0x2d9   : > { %971 = vmatprep.mubr.f32.mxu0 %v3552_v50 }
 0x2da   : > { %1224 = vmatmul.mubr.f32.gmra.mxu1 %v1100_v45 }
 0x2db   : > { %1228 = vmatprep.mubr.f32.mxu1 %v1103_v22 }
 0x2dc   : > { %972 = vmatmul.mubr.f32.gmra.mxu0 %v3558_v29 }
 0x2dd   : > { %977 = vmatprep.mubr.f32.mxu0 %v3541_v46 }
 0x2de   : > { %1229 = vmatmul.mubr.f32.gmra.mxu1 %v1102_v47 }
 0x2df   : > { %1233 = vmatprep.mubr.f32.mxu1 %v1105_v23 }
 0x2e0   : > { %978 = vmatmul.mubr.f32.gmra.mxu0 %v3549_v49 }
 0x2e1   : > { %983 = vmatprep.mubr.f32.mxu0 %v3533_v42 }
 0x2e2   : > { %1234 = vmatmul.mubr.f32.gmra.mxu1 %v1104_v13 }
 0x2e3   : > { %1238 = vmatprep.mubr.f32.mxu1 %v1107_v28 }
 0x2e4   : > { %984 = vmatmul.mubr.f32.gmra.mxu0 %v3538_v24 }
 0x2e5   : > { %989 = vmatprep.mubr.f32.mxu0 %v3526_v40 }
 0x2e6   : > { %1239 = vmatmul.mubr.f32.gmra.mxu1 %v1106_v26 }
 0x2e7   : > { %1243 = vmatprep.mubr.f32.mxu1 %v1109_v51 }
 0x2e8   : > { %990 = vmatmul.mubr.f32.gmra.mxu0 %v3530_v21 }
 0x2e9   : > { %995 = vmatprep.mubr.f32.mxu0 %v3518_v38 }
 0x2ea   : > { %1244 = vmatmul.mubr.f32.gmra.mxu1 %v1108_v27 }
 0x2eb   : > { %1248 = vmatprep.mubr.f32.mxu1 %v1111_v53 }
 0x2ec   : > { %996 = vmatmul.mubr.f32.gmra.mxu0 %v3521_v39 }
 0x2ee   : > { %1249 = vmatmul.mubr.f32.gmra.mxu1 %v1110_v56 }
 0x2ef   : > { %1253 = vmatprep.mubr.f32.mxu1 %v1113_v62 }
 0x2f2   : > { %1254 = vmatmul.mubr.f32.gmra.mxu1 %v1112_v63 }
 0x300   : > { %v3681_v12 = vpop.permute.xlu1 %1333 }
 0x304   : > { %v3685_v18 = vpop.permute.xlu1 %1298 }
 0x308   : > { %v3695_v13 = vpop.permute.xlu1 %1338 }
 0x30c   : > { %v3701_v63 = vpop.permute.xlu1 %1303 }
 0x370   : > { %v907_v1 = vpop.f32.mrf.mxu0 }
 0x371   : > { %v1002_v4 = vmul.f32 %v907_v1, %v3621_v54 }
 0x372   : > { %v909_v2 = vpop.f32.mrf.mxu0 }
 0x373   : > { %v1003_v5 = vmul.f32 %v909_v2, %v3544_v25 }
 0x374   : > { %v913_v6 = vpop.f32.mrf.mxu0 }
 0x375   : > { %v1034_v7 = vadd.f32 %v1003_v5, %v1002_v4  ;;  %v1004_v10 = vmul.f32 %v913_v6, %v3637_v59 }
 0x376   : > { %v915_v8 = vpop.f32.mrf.mxu0  ;;  %v3689_v19 = vpop.f32.mrf.mxu1 }
 0x377   : > { %v1005_v16 = vmul.f32 %v915_v8, %v3625_v55  ;;  %1035 = vadd.xlane.f32.xlu0 %v1034_v7 }
 0x378   : > { %v919_v34 = vpop.f32.mrf.mxu0  ;;  %v1182_v22 = vpop.f32.mrf.mxu1 }
 0x379   : > { %v1037_v35 = vadd.f32 %v1005_v16, %v1004_v10  ;;  %v1006_v36 = vmul.f32 %v919_v34, %v3641_v61 }
 0x37a   : > { %v921_v17 = vpop.f32.mrf.mxu0  ;;  %v3693_v23 = vpop.f32.mrf.mxu1 }
 0x37b   : > { %v1007_v20 = vmul.f32 %v921_v17, %v3632_v57  ;;  %1038 = vadd.xlane.f32.xlu0 %v1037_v35 }
 0x37c   : > { %v925_v54 = vpop.f32.mrf.mxu0  ;;  %v1187_v26 = vpop.f32.mrf.mxu1 }
 0x37d   : > { %v1040_v25 = vadd.f32 %v1007_v20, %v1006_v36  ;;  %v1008_v59 = vmul.f32 %v925_v54, %v3628_v33 }
 0x37e   : > { %v927_v41 = vpop.f32.mrf.mxu0  ;;  %v1190_v53 = vpop.f32.mrf.mxu1 }
 0x37f   : > { %v1009_v55 = vmul.f32 %v927_v41, %v3617_v32  ;;  %1041 = vadd.xlane.f32.xlu1 %v1040_v25  ;;  %v3699_v62 = vmul.f32 2.0, %v1190_v53 }
 0x380   : > { %v931_v43 = vpop.f32.mrf.mxu0 }
 0x381   : > { %v1043_v45 = vadd.f32 %v1009_v55, %v1008_v59  ;;  %v1010_v61 = vmul.f32 %v931_v43, %v3614_v14  ;;  %v1373_v2 = vsub.f32 %v3701_v63, %v3699_v62 }
 0x382   : > { %v933_v47 = vpop.f32.mrf.mxu0 }
 0x383   : > { %v1011_v57 = vmul.f32 %v933_v47, %v3609_v48  ;;  %1044 = vadd.xlane.f32.xlu1 %v1043_v45  ;;  %v1192_v48 = vpop.f32.mrf.mxu1 }
 0x384   : > { %v937_v28 = vpop.f32.mrf.mxu0 }
 0x385   : > { %v1046_v33 = vadd.f32 %v1011_v57, %v1010_v61  ;;  %v1012_v51 = vmul.f32 %v937_v28, %v3605_v44  ;;  %v3707_v44 = vpop.f32.mrf.mxu1 }
 0x386   : > { %v939_v32 = vpop.f32.mrf.mxu0 }
 0x387   : > { %v1013_v27 = vmul.f32 %v939_v32, %v3601_v37  ;;  %1047 = vadd.xlane.f32.xlu0 %v1046_v33  ;;  %v1197_v7 = vpop.f32.mrf.mxu1 }
 0x388   : > { %v943_v56 = vpop.f32.mrf.mxu0  ;;  %v1770_v7 = vld [vmem:[%s3320_s28 + $0x78] sm:$0xff] }
 0x389   : > { %v1049_v14 = vadd.f32 %v1013_v27, %v1012_v51  ;;  %v1014_v4 = vmul.f32 %v943_v56, %v3598_v15  ;;  %v3711_v34 = vpop.f32.mrf.mxu1  ;;  %2425 = vmatprep.subr.mxu0 %v1770_v7  ;;  %2545 = vmatprep.subr.mxu1 %v1770_v7 }
 0x38a   : > { %v945_v1 = vpop.f32.mrf.mxu0  ;;  %2426 = vmatpush3.msra.mxu0 %v1770_v7  ;;  %2561 = vmatpush3.msra.mxu1 %v1770_v7 }
 0x38b   : > { %v1015_v5 = vmul.f32 %v945_v1, %v3593_v11  ;;  %1050 = vadd.xlane.f32.xlu1 %v1049_v14  ;;  %v1202_v36 = vpop.f32.mrf.mxu1 }
 0x38c   : > { %v949_v37 = vpop.f32.mrf.mxu0 }
 0x38d   : > { %v1052_v6 = vadd.f32 %v1015_v5, %v1014_v4  ;;  %v1016_v10 = vmul.f32 %v949_v37, %v3590_v9  ;;  %v3715_v54 = vpop.f32.mrf.mxu1 }
 0x38e   : > { %v951_v8 = vpop.f32.mrf.mxu0 }
 0x38f   : > { %v1017_v16 = vmul.f32 %v951_v8, %v3585_v3  ;;  %1053 = vadd.xlane.f32.xlu0 %v1052_v6  ;;  %v1207_v59 = vpop.f32.mrf.mxu1 }
 0x390   : > { %v955_v35 = vpop.f32.mrf.mxu0 }
 0x391   : > { %v1055_v17 = vadd.f32 %v1017_v16, %v1016_v10  ;;  %v1018_v11 = vmul.f32 %v955_v35, %v3582_v0  ;;  %v3719_v43 = vpop.f32.mrf.mxu1 }
 0x392   : > { %v957_v15 = vpop.f32.mrf.mxu0 }
 0x393   : > { %v1019_v20 = vmul.f32 %v957_v15, %v3577_v60  ;;  %1056 = vadd.xlane.f32.xlu1 %v1055_v17  ;;  %v1212_v47 = vpop.f32.mrf.mxu1 }
 0x394   : > { %v961_v25 = vpop.f32.mrf.mxu0  ;;  %v1266_v47 = vld [vmem:[#allocation3 + $0x38] sm:$0xff] }
 0x395   : > { %v1058_v41 = vadd.f32 %v1019_v20, %v1018_v11  ;;  %v1020_v3 = vmul.f32 %v961_v25, %v3574_v58  ;;  %v3723_v57 = vpop.f32.mrf.mxu1  ;;  %v1768_v25 = vld [vmem:[%s3320_s28 + $0x68] sm:$0xff] }
 0x396   : > { %v963_v9 = vpop.f32.mrf.mxu0 }
 0x397   : > { %v1021_v55 = vmul.f32 %v963_v9, %v3569_v31  ;;  %1059 = vadd.xlane.f32.xlu0 %v1058_v41  ;;  %v1217_v26 = vpop.f32.mrf.mxu1 }
 0x398   : > { %v967_v45 = vpop.f32.mrf.mxu0  ;;  %v1762_v26 = vld [vmem:[%s3320_s28 + $0x38] sm:$0xff] }
 0x399   : > { %v1061_v22 = vadd.f32 %v1021_v55, %v1020_v3  ;;  %v1022_v60 = vmul.f32 %v967_v45, %v3566_v30  ;;  %v3727_v51 = vpop.f32.mrf.mxu1  ;;  %v1767_v3 = vld [vmem:[%s3320_s28 + $0x60] sm:$0xff]  ;;  %v1766_v55 = vld [vmem:[%s3320_s28 + $0x58] sm:$0xff] }
 0x39a   : > { %v969_v0 = vpop.f32.mrf.mxu0 }
 0x39b   : > { %v1023_v61 = vmul.f32 %v969_v0, %v3561_v52  ;;  %1062 = vadd.xlane.f32.xlu1 %v1061_v22  ;;  %v1222_v30 = vpop.f32.mrf.mxu1  ;;  %v1765_v22 = vld [vmem:[%s3320_s28 + $0x50] sm:$0xff]  ;;  %v1274_v0 = vld [vmem:[#allocation3 + $0x78] sm:$0xff] }
 0x39c   : > { %v973_v28 = vpop.f32.mrf.mxu0  ;;  %v1756_v30 = vld [vmem:[%s3320_s28 + $0x8] sm:$0xff] }
 0x39d   : > { %v1064_v33 = vadd.f32 %v1023_v61, %v1022_v60  ;;  %v1024_v31 = vmul.f32 %v973_v28, %v3558_v29  ;;  %v3731_v48 = vpop.f32.mrf.mxu1  ;;  %v1764_v28 = vld [vmem:[%s3320_s28 + $0x48] sm:$0xff] }
 0x39e   : > { %v975_v58 = vpop.f32.mrf.mxu0 }
 0x39f   : > { %v1025_v32 = vmul.f32 %v975_v58, %v3552_v50  ;;  %1065 = vadd.xlane.f32.xlu0 %v1064_v33  ;;  %v1227_v29 = vpop.f32.mrf.mxu1  ;;  %v1763_v33 = vld [vmem:[%s3320_s28 + $0x40] sm:$0xff]  ;;  %v1761_v58 = vld [vmem:[%s3320_s28 + $0x30] sm:$0xff] }
 0x3a0   : > { %v979_v27 = vpop.f32.mrf.mxu0 }
 0x3a1   : > { %v1067_v53 = vadd.f32 %v1025_v32, %v1024_v31  ;;  %v1026_v52 = vmul.f32 %v979_v27, %v3549_v49  ;;  %v3735_v6 = vpop.f32.mrf.mxu1  ;;  %v1760_v31 = vld [vmem:[%s3320_s28 + $0x28] sm:$0xff]  ;;  %v1759_v32 = vld [vmem:[%s3320_s28 + $0x20] sm:$0xff]  ;;  %v1758_v27 = vld [vmem:[%s3320_s28 + $0x18] sm:$0xff] }
 0x3a2   : > { %v981_v56 = vpop.f32.mrf.mxu0 }
 0x3a3   : > { %v1027_v14 = vmul.f32 %v981_v56, %v3541_v46  ;;  %1068 = vadd.xlane.f32.xlu1 %v1067_v53  ;;  %v1232_v49 = vpop.f32.mrf.mxu1  ;;  %v1757_v53 = vld [vmem:[%s3320_s28 + $0x10] sm:$0xff]  ;;  %v1755_v56 = vld [vmem:[%s3320_s28] sm:$0xff] }
 0x3a4   : > { %v985_v1 = vpop.f32.mrf.mxu0 }
 0x3a5   : > { %v1070_v4 = vadd.f32 %v1027_v14, %v1026_v52  ;;  %v1028_v50 = vmul.f32 %v985_v1, %v3538_v24  ;;  %v1769_v24 = vld [vmem:[%s3320_s28 + $0x70] sm:$0xff]  ;;  %v3767_v52 = vpop.permute.xlu1 %1343  ;;  %v3771_v1 = vpop.permute.xlu0 %1293 }
 0x3a6   : > { %v987_v5 = vpop.f32.mrf.mxu0  ;;  %2427 = vmatprep.subr.mxu0 %v1769_v24  ;;  %2546 = vmatprep.subr.mxu1 %v1769_v24 }
 0x3a7   : > { %v1029_v37 = vmul.f32 %v987_v5, %v3533_v42  ;;  %1071 = vadd.xlane.f32.xlu0 %v1070_v4  ;;  %v3740_v42 = vpop.f32.mrf.mxu1  ;;  %2428 = vmatpush3.msra.mxu0 %v1769_v24 }
 0x3a8   : > { %v991_v8 = vpop.f32.mrf.mxu0  ;;  %2562 = vmatpush3.msra.mxu1 %v1769_v24  ;;  %2429 = vmatprep.subr.mxu0 %v1768_v25 }
 0x3a9   : > { %v1073_v46 = vadd.f32 %v1029_v37, %v1028_v50  ;;  %v1030_v16 = vmul.f32 %v991_v8, %v3530_v21  ;;  %v1237_v15 = vpop.f32.mrf.mxu1  ;;  %2547 = vmatprep.subr.mxu1 %v1768_v25  ;;  %2430 = vmatpush3.msra.mxu0 %v1768_v25  ;;  %v3769_v14 = vpop.permute.xlu1 %1308 }
 0x3aa   : > { %v993_v10 = vpop.f32.mrf.mxu0  ;;  %2563 = vmatpush3.msra.mxu1 %v1768_v25  ;;  %2431 = vmatprep.subr.mxu0 %v1767_v3  ;;  %v3775_v29 = vpop.permute.xlu0 %1353 }
 0x3ab   : > { %v1031_v35 = vmul.f32 %v993_v10, %v3526_v40  ;;  %1074 = vadd.xlane.f32.xlu1 %v1073_v46  ;;  %v3745_v40 = vpop.f32.mrf.mxu1  ;;  %2548 = vmatprep.subr.mxu1 %v1767_v3  ;;  %v1403_v10 = vlaneseq }
 0x3ac   : > { %v997_v17 = vpop.f32.mrf.mxu0  ;;  %2432 = vmatpush3.msra.mxu0 %v1767_v3  ;;  %2564 = vmatpush3.msra.mxu1 %v1767_v3 }
 0x3ad   : > { %v1076_v36 = vadd.f32 %v1031_v35, %v1030_v16  ;;  %v1032_v20 = vmul.f32 %v997_v17, %v3521_v39  ;;  %v1242_v59 = vpop.f32.mrf.mxu1  ;;  %2433 = vmatprep.subr.mxu0 %v1766_v55  ;;  %2549 = vmatprep.subr.mxu1 %v1766_v55  ;;  %v3773_v4 = vpop.permute.xlu1 %1348  ;;  %v3787_v24 = vand.u32 127, %v1403_v10 }
 0x3ae   : > { %v999_v11 = vpop.f32.mrf.mxu0  ;;  %2434 = vmatpush3.msra.mxu0 %v1766_v55  ;;  %2565 = vmatpush3.msra.mxu1 %v1766_v55  ;;  %v3779_v50 = vpop.permute.xlu0 %1358 }
 0x3af   : > { %v1033_v21 = vmul.f32 %v999_v11, %v3518_v38  ;;  %1077 = vadd.xlane.f32.xlu0 %v1076_v36  ;;  %v3748_v9 = vpop.f32.mrf.mxu1  ;;  %2435 = vmatprep.subr.mxu0 %v1765_v22  ;;  %v1409_v36 = vadd.s32 4294967288, %v3787_v24  ;;  %v1416_v15 = vadd.s32 4294967280, %v3787_v24  ;;  %v1430_v25 = vadd.s32 4294967264, %v3787_v24 }
 0x3b0   : > { %2550 = vmatprep.subr.mxu1 %v1765_v22  ;;  %2436 = vmatpush3.msra.mxu0 %v1765_v22  ;;  %v1437_v3 = vadd.s32 4294967256, %v3787_v24  ;;  %v1444_v55 = vadd.s32 4294967248, %v3787_v24 }
 0x3b1   : > { %v1079_v41 = vadd.f32 %v1033_v21, %v1032_v20  ;;  %v1247_v39 = vpop.f32.mrf.mxu1  ;;  %2566 = vmatpush3.msra.mxu1 %v1765_v22  ;;  %2437 = vmatprep.subr.mxu0 %v1764_v28  ;;  %v3777_v5 = vpop.permute.xlu1 %1313  ;;  %v3791_v20 = vshrl.u32 %v1403_v10, 7  ;;  %v1423_v21 = vadd.s32 4294967272, %v3787_v24 }
 0x3b2   : > { %2551 = vmatprep.subr.mxu1 %v1764_v28  ;;  %2438 = vmatpush3.msra.mxu0 %v1764_v28  ;;  %v3783_v7 = vpop.permute.xlu0 %1363 }
 0x3b3   : > { %1080 = vadd.xlane.f32.xlu1 %v1079_v41  ;;  %v3751_v38 = vpop.f32.mrf.mxu1  ;;  %2567 = vmatpush3.msra.mxu1 %v1764_v28  ;;  %v1412_v59 = vsub.s32 %v1409_v36, %v3791_v20  ;;  %v1419_v39 = vsub.s32 %v1416_v15, %v3791_v20  ;;  %v1407_v22 = vsub.s32 %v3787_v24, %v3791_v20  ;;  %v1458_v28 = vadd.s32 4294967232, %v3787_v24 }
 0x3b4   : > { %2439 = vmatprep.subr.mxu0 %v1763_v33  ;;  %2552 = vmatprep.subr.mxu1 %v1763_v33  ;;  %v1479_v15 = vadd.s32 4294967208, %v3787_v24 }
 0x3b5   : > { %v1252_v45 = vpop.f32.mrf.mxu1  ;;  %2440 = vmatpush3.msra.mxu0 %v1763_v33  ;;  %2568 = vmatpush3.msra.mxu1 %v1763_v33  ;;  %v3781_v37 = vpop.permute.xlu1 %1318 }
 0x3b6   : > { %2441 = vmatprep.subr.mxu0 %v1762_v26  ;;  %2553 = vmatprep.subr.mxu1 %v1762_v26 }
 0x3b7   : > { %v3755_v60 = vpop.f32.mrf.mxu1  ;;  %2442 = vmatpush3.msra.mxu0 %v1762_v26  ;;  %2569 = vmatpush3.msra.mxu1 %v1762_v26 }
 0x3b8   : > { %2443 = vmatprep.subr.mxu0 %v1761_v58  ;;  %2554 = vmatprep.subr.mxu1 %v1761_v58 }
 0x3b9   : > { %v1257_v61 = vpop.f32.mrf.mxu1  ;;  %2444 = vmatpush3.msra.mxu0 %v1761_v58  ;;  %2570 = vmatpush3.msra.mxu1 %v1761_v58  ;;  %v3785_v8 = vpop.permute.xlu1 %1323  ;;  %v1440_v58 = vsub.s32 %v1437_v3, %v3791_v20 }
 0x3ba   : > { %2445 = vmatprep.subr.mxu0 %v1760_v31  ;;  %2555 = vmatprep.subr.mxu1 %v1760_v31  ;;  %v1433_v61 = vsub.s32 %v1430_v25, %v3791_v20 }
 0x3bb   : > { %2446 = vmatpush3.msra.mxu0 %v1760_v31  ;;  %2571 = vmatpush3.msra.mxu1 %v1760_v31  ;;  %v1465_v31 = vadd.s32 4294967224, %v3787_v24 }
 0x3bc   : > { %2447 = vmatprep.subr.mxu0 %v1759_v32  ;;  %2556 = vmatprep.subr.mxu1 %v1759_v32 }
 0x3bd   : > { %2448 = vmatpush3.msra.mxu0 %v1759_v32  ;;  %2572 = vmatpush3.msra.mxu1 %v1759_v32 }
 0x3be   : > { %2449 = vmatprep.subr.mxu0 %v1758_v27  ;;  %2557 = vmatprep.subr.mxu1 %v1758_v27 }
 0x3bf   : > { %2450 = vmatpush3.msra.mxu0 %v1758_v27  ;;  %2573 = vmatpush3.msra.mxu1 %v1758_v27  ;;  %v1447_v27 = vsub.s32 %v1444_v55, %v3791_v20  ;;  %v1493_v55 = vadd.s32 4294967192, %v3787_v24 }
 0x3c0   : > { %2451 = vmatprep.subr.mxu0 %v1757_v53  ;;  %2558 = vmatprep.subr.mxu1 %v1757_v53 }
 0x3c1   : > { %2452 = vmatpush3.msra.mxu0 %v1757_v53  ;;  %2574 = vmatpush3.msra.mxu1 %v1757_v53 }
 0x3c2   : > { %2453 = vmatprep.subr.mxu0 %v1756_v30  ;;  %2559 = vmatprep.subr.mxu1 %v1756_v30 }
 0x3c3   : > { %2454 = vmatpush3.msra.mxu0 %v1756_v30  ;;  %2575 = vmatpush3.msra.mxu1 %v1756_v30  ;;  %v1472_v30 = vadd.s32 4294967216, %v3787_v24 }
 0x3c4   : > { %1328 = vperm.xlu1 %2710, %v1266_v47   ;;  %2455 = vmatprep.subr.mxu0 %v1755_v56  ;;  %v1426_v47 = vsub.s32 %v1423_v21, %v3791_v20 }
 0x3c5   : > { %1368 = vperm.xlu0 %2709, %v1274_v0   ;;  %2560 = vmatprep.subr.mxu1 %v1755_v56  ;;  %v1451_v0 = vadd.s32 4294967240, %v3787_v24 }
 0x3c6   : > { %2456 = vmatpush3.msra.mxu0 %v1755_v56  ;;  %2576 = vmatpush3.msra.mxu1 %v1755_v56 }
 0x3c7   : > { %v1454_v36 = vsub.s32 %v1451_v0, %v3791_v20 }
 0x400   : > { %v1036_v46 = vpop.xlane.xlu0 %1035 }
 0x401   : > { %v1408_v56 = vrot.slane %v1036_v46, %v1407_v22  ;;  %v1475_v22 = vsub.s32 %v1472_v30, %v3791_v20  ;;  %v1507_v30 = vadd.s32 4294967176, %v3787_v24 }
 0x404   : > { %v1039_v16 = vpop.xlane.xlu0 %1038 }
 0x405   : > { %v1413_v26 = vrot.slane %v1039_v16, %v1412_v59  ;;  %v1461_v16 = vsub.s32 %v1458_v28, %v3791_v20  ;;  %v1486_v59 = vadd.s32 4294967200, %v3787_v24  ;;  %v1482_v28 = vsub.s32 %v1479_v15, %v3791_v20 }
 0x408   : > { %v1042_v49 = vpop.xlane.xlu1 %1041 }
 0x409   : > { %v1420_v32 = vrot.slane %v1042_v49, %v1419_v39  ;;  %v1415_v49 = vsel %vm1414_vm1, %v1413_v26, %v1408_v56  ;;  %v1468_v39 = vsub.s32 %v1465_v31, %v3791_v20 }
 0x40b   : > { %v1422_v46 = vsel %vm1421_vm2, %v1420_v32, %v1415_v49 }
 0x40c   : > { %v1045_v35 = vpop.xlane.xlu1 %1044 }
 0x40d   : > { %v1427_v10 = vrot.slane %v1045_v35, %v1426_v47 }
 0x40f   : > { %v1429_v0 = vsel %vm1428_vm3, %v1427_v10, %v1422_v46  ;;  %v1283_v46 = vmul.f32 2.0, %v3727_v51  ;;  %v1280_v51 = vmul.f32 2.0, %v3715_v54  ;;  %v1290_v54 = vmul.f32 2.0, %v3755_v60 }
 0x410   : > { %v1048_v17 = vpop.xlane.xlu0 %1047 }
 0x411   : > { %v1434_v21 = vrot.slane %v1048_v17, %v1433_v61  ;;  %v1500_v17 = vadd.s32 4294967184, %v3787_v24 }
 0x414   : > { %v1051_v11 = vpop.xlane.xlu1 %1050 }
 0x415   : > { %v1441_v3 = vrot.slane %v1051_v11, %v1440_v58  ;;  %v1436_v11 = vsel %vm1435_vm4, %v1434_v21, %v1429_v0  ;;  %v1489_v58 = vsub.s32 %v1486_v59, %v3791_v20  ;;  %v1275_v21 = vmul.f32 2.0, %v3689_v19 }
 0x418   : > { %v1054_v41 = vpop.xlane.xlu0 %1053 }
 0x419   : > { %v1448_v35 = vrot.slane %v1054_v41, %v1447_v27  ;;  %v1443_v41 = vsel %vm1442_vm5, %v1441_v3, %v1436_v11  ;;  %v1496_v27 = vsub.s32 %v1493_v55, %v3791_v20  ;;  %v1279_v11 = vmul.f32 2.0, %v3711_v34 }
 0x41b   : > { %v1450_v56 = vsel %vm1449_vm6, %v1448_v35, %v1443_v41  ;;  %v1284_v35 = vmul.f32 2.0, %v3731_v48  ;;  %v1379_v48 = vsub.f32 %v3681_v12, %v1283_v46  ;;  %v1285_v41 = vmul.f32 2.0, %v3735_v6 }
 0x41c   : > { %v1057_v45 = vpop.xlane.xlu1 %1056  ;;  %v1375_v12 = vsub.f32 %v3777_v5, %v1279_v11 }
 0x41d   : > { %v1455_v61 = vrot.slane %v1057_v45, %v1454_v36  ;;  %v1503_v36 = vsub.s32 %v1500_v17, %v3791_v20  ;;  %v1371_v17 = vsub.f32 %v3771_v1, %v1275_v21  ;;  %v1286_v1 = vmul.f32 2.0, %v3740_v42 }
 0x41e   : > { %v1720_v21 = vstv %s2364_s11 }
 0x41f   : > { %v1457_v15 = vsel %vm1456_vm7, %v1455_v61, %v1450_v56  ;;  %v1287_v56 = vmul.f32 2.0, %v3745_v40  ;;  %v1382_v5 = vsub.f32 %v3773_v4, %v1286_v1 }
 0x420   : > { %v1060_v33 = vpop.xlane.xlu0 %1059 }
 0x421   : > { %v1462_v26 = vrot.slane %v1060_v33, %v1461_v16 }
 0x423   : > { %v1464_v16 = vsel %vm1463_vm8, %v1462_v26, %v1457_v15 }
 0x424   : > { %v1063_v53 = vpop.xlane.xlu1 %1062 }
 0x425   : > { %v1469_v32 = vrot.slane %v1063_v53, %v1468_v39  ;;  %v1510_v39 = vsub.s32 %v1507_v30, %v3791_v20  ;;  %v1278_v20 = vmul.f32 2.0, %v3707_v44  ;;  %v1281_v44 = vmul.f32 2.0, %v3719_v43 }
 0x426   : > { %v1381_v43 = vsub.f32 %v3767_v52, %v1285_v41 }
 0x427   : > { %v1471_v49 = vsel %vm1470_vm9, %v1469_v32, %v1464_v16  ;;  %v1374_v34 = vsub.f32 %v3769_v14, %v1278_v20  ;;  %v1288_v14 = vmul.f32 2.0, %v3748_v9  ;;  %v1377_v62 = vsub.f32 %v3785_v8, %v1281_v44 }
 0x428   : > { %v1066_v25 = vpop.xlane.xlu0 %1065 }
 0x429   : > { %v1476_v45 = vrot.slane %v1066_v25, %v1475_v22  ;;  %v1384_v4 = vsub.f32 %v3779_v50, %v1288_v14 }
 0x42b   : > { %v1478_v25 = vsel %vm1477_vm10, %v1476_v45, %v1471_v49 }
 0x42c   : > { %v1069_v47 = vpop.xlane.xlu1 %1068 }
 0x42d   : > { %v1483_v33 = vrot.slane %v1069_v47, %v1482_v28  ;;  %v1276_v28 = vmul.f32 2.0, %v3693_v23 }
 0x42f   : > { %v1485_v22 = vsel %vm1484_vm11, %v1483_v33, %v1478_v25  ;;  %v1372_v23 = vsub.f32 %v3685_v18, %v1276_v28  ;;  %v1282_v18 = vmul.f32 2.0, %v3723_v57  ;;  %v1383_v57 = vsub.f32 %v3775_v29, %v1287_v56 }
 0x430   : > { %v1072_v31 = vpop.xlane.xlu0 %1071 }
 0x431   : > { %v1490_v53 = vrot.slane %v1072_v31, %v1489_v58  ;;  %v1380_v58 = vsub.f32 %v3695_v13, %v1284_v35  ;;  %v1376_v13 = vsub.f32 %v3781_v37, %v1280_v51  ;;  %v1289_v37 = vmul.f32 2.0, %v3751_v38 }
 0x433   : > { %v1492_v19 = vsel %vm1491_vm12, %v1490_v53, %v1485_v22  ;;  %v1385_v33 = vsub.f32 %v3783_v7, %v1289_v37 }
 0x434   : > { %v1075_v10 = vpop.xlane.xlu1 %1074 }
 0x435   : > { %v1497_v3 = vrot.slane %v1075_v10, %v1496_v27 }
 0x437   : > { %v1499_v0 = vsel %vm1498_vm13, %v1497_v3, %v1492_v19 }
 0x438   : > { %v1078_v59 = vpop.xlane.xlu0 %1077 }
 0x439   : > { %v1504_v55 = vrot.slane %v1078_v59, %v1503_v36 }
 0x43b   : > { %v1506_v26 = vsel %vm1505_vm14, %v1504_v55, %v1499_v0 }
 0x43c   : > { %v1081_v47 = vpop.xlane.xlu1 %1080 }
 0x43d   : > { %v1511_v61 = vrot.slane %v1081_v47, %v1510_v39  ;;  %v3895_v47 = vadd.s32 %v1720_v21, %v3787_v24 }
 0x43f   : > { %v1513_v31 = vsel %vm1512_vm15, %v1511_v61, %v1506_v26 }
 0x440   : > { %v1527_v32 = vadd.f32 %v1513_v31, %v1371_v17  ;;  %v1535_v27 = vadd.f32 %v1513_v31, %v1379_v48  ;;  %v1536_v30 = vadd.f32 %v1513_v31, %v1380_v58  ;;  %v1529_v6 = vadd.f32 %v1513_v31, %v1373_v2  ;;  %v1369_v42 = vpop.permute.xlu0 %1368  ;;  %v1329_v45 = vpop.permute.xlu1 %1328 }
 0x441   : > { %v1537_v63 = vadd.f32 %v1513_v31, %v1381_v43  ;;  %v1386_v2 = vsub.f32 %v1369_v42, %v1290_v54  ;;  %v1378_v36 = vsub.f32 %v1329_v45, %v1282_v18  ;;  %v1538_v52 = vadd.f32 %v1513_v31, %v1382_v5 }
 0x442   : > { %v3856_v60 = vmax.f32 %v1527_v32, 0.0  ;;  %v3860_v40 = vmax.f32 %v1535_v27, 0.0  ;;  %v3862_v10 = vmax.f32 %v1536_v30, 0.0  ;;  %v3867_v9 = vmax.f32 %v1529_v6, 0.0 }
 0x443   : > { %v1542_v38 = vadd.f32 %v1513_v31, %v1386_v2  ;;  %v1534_v15 = vadd.f32 %v1513_v31, %v1378_v36  ;;  %v1530_v8 = vadd.f32 %v1513_v31, %v1374_v34  ;;  %v1531_v16 = vadd.f32 %v1513_v31, %v1375_v12 }
 0x444   : > { %2711 = vrsqrt.f32 %v3862_v10  ;;  %v3874_v53 = vmax.f32 %v1537_v63, 0.0  ;;  %v1532_v49 = vadd.f32 %v1513_v31, %v1376_v13  ;;  %v3880_v3 = vmax.f32 %v1538_v52, 0.0 }
 0x445   : > { %2713 = vrsqrt.f32 %v3856_v60  ;;  %v3876_v29 = vmax.f32 %v1542_v38, 0.0  ;;  %v3878_v59 = vmax.f32 %v1534_v15, 0.0  ;;  %v1528_v50 = vadd.f32 %v1513_v31, %v1372_v23 }
 0x446   : > { %2715 = vrsqrt.f32 %v3860_v40  ;;  %v1533_v39 = vadd.f32 %v1513_v31, %v1377_v62  ;;  %v1539_v25 = vadd.f32 %v1513_v31, %v1383_v57  ;;  %v1540_v7 = vadd.f32 %v1513_v31, %v1384_v4 }
 0x447   : > { %2717 = vrsqrt.f32 %v3867_v9  ;;  %v1541_v55 = vadd.f32 %v1513_v31, %v1385_v33  ;;  %v3885_v46 = vmax.f32 %v1530_v8, 0.0  ;;  %v3887_v35 = vmax.f32 %v1528_v50, 0.0 }
 0x448   : > { %2719 = vrsqrt.f32 %v3876_v29  ;;  %v3890_v22 = vmax.f32 %v1531_v16, 0.0  ;;  %v3892_v19 = vmax.f32 %v1532_v49, 0.0  ;;  %v3898_v17 = vmax.f32 %v1533_v39, 0.0 }
 0x449   : > { %2721 = vrsqrt.f32 %v3878_v59  ;;  %v3900_v0 = vmax.f32 %v1539_v25, 0.0  ;;  %v3902_v61 = vmax.f32 %v1540_v7, 0.0  ;;  %v3905_v28 = vmax.f32 %v1541_v55, 0.0 }
 0x44a   : > { %2723 = vrsqrt.f32 %v3874_v53  ;;  %vm1624_vm0 = vcmp.eq.f32.partialorder %v3862_v10, inf  ;;  %vm1626_vm1 = vcmp.eq.f32.partialorder %v3862_v10, 0.0  ;;  %v1627_v20 = vand.u32 2147483648, %v3862_v10 }
 0x44b   : > { %2725 = vrsqrt.f32 %v3880_v3  ;;  %vm1561_vm2 = vcmp.eq.f32.partialorder %v3856_v60, inf  ;;  %vm1563_vm3 = vcmp.eq.f32.partialorder %v3856_v60, 0.0  ;;  %v1564_v24 = vand.u32 2147483648, %v3856_v60 }
 0x44c   : > { %2727 = vrsqrt.f32 %v3887_v35  ;;  %vm1617_vm4 = vcmp.eq.f32.partialorder %v3860_v40, inf  ;;  %vm1619_vm5 = vcmp.eq.f32.partialorder %v3860_v40, 0.0  ;;  %v1620_v11 = vand.u32 2147483648, %v3860_v40 }
 0x44d   : > { %2729 = vrsqrt.f32 %v3885_v46  ;;  %v1669_v51 = vand.u32 2147483648, %v3876_v29  ;;  %vm1610_vm6 = vcmp.eq.f32.partialorder %v3878_v59, inf  ;;  %vm1575_vm7 = vcmp.eq.f32.partialorder %v3867_v9, inf }
 0x44e   : > { %2731 = vrsqrt.f32 %v3890_v22  ;;  %vm1577_vm8 = vcmp.eq.f32.partialorder %v3867_v9, 0.0  ;;  %v1613_v31 = vand.u32 2147483648, %v3878_v59  ;;  %v1578_v41 = vand.u32 2147483648, %v3867_v9 }
 0x44f   : > { %2733 = vrsqrt.f32 %v3900_v0  ;;  %vm1666_vm9 = vcmp.eq.f32.partialorder %v3876_v29, inf  ;;  %v1571_v27 = vand.u32 2147483648, %v3887_v35  ;;  %vm1631_vm10 = vcmp.eq.f32.partialorder %v3874_v53, inf }
 0x450   : > { %v1634_v30 = vand.u32 2147483648, %v3874_v53  ;;  %2735 = vrsqrt.f32 %v3902_v61  ;;  %vm1612_vm11 = vcmp.eq.f32.partialorder %v3878_v59, 0.0  ;;  %vm1568_vm12 = vcmp.eq.f32.partialorder %v3887_v35, inf }
 0x451   : > { %v2712_v26 = vpop.eup %2711  ;;  %vm1633_vm13 = vcmp.eq.f32.partialorder %v3874_v53, 0.0  ;;  %v1641_v34 = vand.u32 2147483648, %v3880_v3  ;;  %2737 = vrsqrt.f32 %v3892_v19  ;;  %vm1570_vm14 = vcmp.eq.f32.partialorder %v3887_v35, 0.0 }
 0x452   : > { %v2714_v48 = vpop.eup %2713  ;;  %v1623_v58 = vmul.f32 %v2712_v26, %v3862_v10  ;;  %v1585_v56 = vand.u32 2147483648, %v3885_v46  ;;  %2739 = vrsqrt.f32 %v3898_v17  ;;  %vm1668_vm15 = vcmp.eq.f32.partialorder %v3876_v29, 0.0 }
 0x453   : > { %v2716_v32 = vpop.eup %2715  ;;  %v1560_v1 = vmul.f32 %v2714_v48, %v3856_v60  ;;  %2741 = vrsqrt.f32 %v3905_v28  ;;  %v1655_v16 = vand.u32 2147483648, %v3902_v61  ;;  %v1599_v49 = vand.u32 2147483648, %v3892_v19 }
 0x454   : > { %v1625_v23 = vsel %vm1624_vm0, %v3862_v10, %v1623_v58  ;;  %v1616_v44 = vmul.f32 %v2716_v32, %v3860_v40  ;;  %v2718_v54 = vpop.eup %2717  ;;  %vm1638_vm0 = vcmp.eq.f32.partialorder %v3880_v3, inf }
 0x455   : > { %v1628_v12 = vsel %vm1626_vm1, %v1627_v20, %v1625_v23  ;;  %v1562_v13 = vsel %vm1561_vm2, %v3856_v60, %v1560_v1  ;;  %v2720_v6 = vpop.eup %2719  ;;  %v1574_v43 = vmul.f32 %v2718_v54, %v3867_v9  ;;  %vm1640_vm1 = vcmp.eq.f32.partialorder %v3880_v3, 0.0 }
 0x456   : > { %v1680_v42 = vmul.f32 -0.5, %v1628_v12  ;;  %v1565_v45 = vsel %vm1563_vm3, %v1564_v24, %v1562_v13  ;;  %v1618_v18 = vsel %vm1617_vm4, %v3860_v40, %v1616_v44  ;;  %v2722_v14 = vpop.eup %2721  ;;  %v1665_v5 = vmul.f32 %v2720_v6, %v3876_v29 }
 0x457   : > { %v1671_v37 = vmul.f32 -0.5, %v1565_v45  ;;  %v1621_v10 = vsel %vm1619_vm5, %v1620_v11, %v1618_v18  ;;  %v1592_v60 = vand.u32 2147483648, %v3890_v22  ;;  %v2724_v62 = vpop.eup %2723  ;;  %v1609_v2 = vmul.f32 %v2722_v14, %v3878_v59 }
 0x458   : > { %v1705_v63 = vmul.f32 1.442695, %v1680_v42  ;;  %v1679_v36 = vmul.f32 -0.5, %v1621_v10  ;;  %v1576_v57 = vsel %vm1575_vm7, %v3867_v9, %v1574_v43  ;;  %vm1582_vm2 = vcmp.eq.f32.partialorder %v3885_v46, inf  ;;  %v2726_v52 = vpop.eup %2725 }
 0x459   : > { %v1687_v4 = vmul.f32 1.442695, %v1671_v37  ;;  %v1579_v40 = vsel %vm1577_vm8, %v1578_v41, %v1576_v57  ;;  %v1630_v38 = vmul.f32 %v2724_v62, %v3874_v53  ;;  %vm1584_vm3 = vcmp.eq.f32.partialorder %v3885_v46, 0.0  ;;  %v2728_v15 = vpop.eup %2727 }
 0x45a   : > { %vm1589_vm4 = vcmp.eq.f32.partialorder %v3890_v22, inf  ;;  %2743 = vpow2.f32 %v1705_v63  ;;  %v1611_v33 = vsel %vm1610_vm6, %v3878_v59, %v1609_v2  ;;  %v1703_v8 = vmul.f32 1.442695, %v1679_v36  ;;  %v2730_v50 = vpop.eup %2729 }
 0x45b   : > { %vm1591_vm5 = vcmp.eq.f32.partialorder %v3890_v22, 0.0  ;;  %v1648_v9 = vand.u32 2147483648, %v3900_v0  ;;  %2745 = vpow2.f32 %v1687_v4  ;;  %v1567_v21 = vmul.f32 %v2728_v15, %v3887_v35  ;;  %v2732_v55 = vpop.eup %2731 }
 0x45c   : > { %vm1645_vm7 = vcmp.eq.f32.partialorder %v3900_v0, inf  ;;  %v1667_v39 = vsel %vm1666_vm9, %v3876_v29, %v1665_v5  ;;  %2747 = vpow2.f32 %v1703_v8  ;;  %v1673_v25 = vmul.f32 -0.5, %v1579_v40 }
 0x45d   : > { %v1632_v7 = vsel %vm1631_vm10, %v3874_v53, %v1630_v38  ;;  %vm1647_vm6 = vcmp.eq.f32.partialorder %v3900_v0, 0.0  ;;  %v1614_v20 = vsel %vm1612_vm11, %v1613_v31, %v1611_v33  ;;  %v1569_v24 = vsel %vm1568_vm12, %v3887_v35, %v1567_v21  ;;  %v2734_v31 = vpop.eup %2733 }
 0x45e   : > { %v1635_v11 = vsel %vm1633_vm13, %v1634_v30, %v1632_v7  ;;  %v1637_v26 = vmul.f32 %v2726_v52, %v3880_v3  ;;  %vm1652_vm8 = vcmp.eq.f32.partialorder %v3902_v61, inf  ;;  %vm1596_vm9 = vcmp.eq.f32.partialorder %v3892_v19, inf }
 0x45f   : > { %vm1722_vm10 = vcmp.lt.s32.totalorder %v3895_v47, 320  ;;  %v1572_v59 = vsel %vm1570_vm14, %v1571_v27, %v1569_v24  ;;  %v1691_v48 = vmul.f32 1.442695, %v1673_v25  ;;  %v1681_v58 = vmul.f32 -0.5, %v1635_v11  ;;  %v2736_v27 = vpop.eup %2735  ;;  %v1952_v47 = vld [vmem:[#allocation5 + $0x20] sm:$0xff] }
 0x460   : > { %vm1654_vm11 = vcmp.eq.f32.partialorder %v3902_v61, 0.0  ;;  %vm1598_vm12 = vcmp.eq.f32.partialorder %v3892_v19, 0.0  ;;  %vm1603_vm13 = vcmp.eq.f32.partialorder %v3898_v17, inf  ;;  %v1606_v53 = vand.u32 2147483648, %v3898_v17  ;;  %v2738_v29 = vpop.eup %2737 }
 0x461   : > { %v1670_v41 = vsel %vm1668_vm15, %v1669_v51, %v1667_v39  ;;  %v1672_v32 = vmul.f32 -0.5, %v1572_v59  ;;  %v1639_v35 = vsel %vm1638_vm0, %v3880_v3, %v1637_v26  ;;  %v1581_v1 = vmul.f32 %v2730_v50, %v3885_v46  ;;  %v2740_v6 = vpop.eup %2739 }
 0x462   : > { %v1678_v30 = vmul.f32 -0.5, %v1614_v20  ;;  %v1707_v23 = vmul.f32 1.442695, %v1681_v58  ;;  %v1642_v44 = vsel %vm1640_vm1, %v1641_v34, %v1639_v35  ;;  %v1588_v54 = vmul.f32 %v2732_v55, %v3890_v22  ;;  %v2742_v63 = vpop.eup %2741 }
 0x463   : > { %vm1605_vm14 = vcmp.eq.f32.partialorder %v3898_v17, 0.0  ;;  %v1689_v51 = vmul.f32 1.442695, %v1672_v32  ;;  %2749 = vpow2.f32 %v1691_v48  ;;  %v1682_v12 = vmul.f32 -0.5, %v1642_v44 }
 0x464   : > { %v1583_v13 = vsel %vm1582_vm2, %v3885_v46, %v1581_v1  ;;  %2751 = vpow2.f32 %v1707_v23  ;;  %v1590_v34 = vsel %vm1589_vm4, %v3890_v22, %v1588_v54  ;;  %v1644_v42 = vmul.f32 %v2734_v31, %v3900_v0 }
 0x465   : > { %v1586_v3 = vsel %vm1584_vm3, %v1585_v56, %v1583_v13  ;;  %2753 = vpow2.f32 %v1689_v51  ;;  %v1709_v45 = vmul.f32 1.442695, %v1682_v12  ;;  %v1593_v43 = vsel %vm1591_vm5, %v1592_v60, %v1590_v34 }
 0x466   : > { %v1674_v18 = vmul.f32 -0.5, %v1586_v3  ;;  %v1675_v14 = vmul.f32 -0.5, %v1593_v43  ;;  %v1646_v46 = vsel %vm1645_vm7, %v3900_v0, %v1644_v42  ;;  %v1651_v56 = vmul.f32 %v2736_v27, %v3902_v61 }
 0x467   : > { %v1595_v5 = vmul.f32 %v2738_v29, %v3892_v19  ;;  %2755 = vpow2.f32 %v1709_v45  ;;  %v1649_v10 = vsel %vm1647_vm6, %v1648_v9, %v1646_v46  ;;  %v1602_v62 = vmul.f32 %v2740_v6, %v3898_v17  ;;  %v4053_v57 = vpop.eup %2743  ;;  %v1948_v46 = vld [vmem:[#allocation5] sm:$0xff] }
 0x468   : > { %v1693_v37 = vmul.f32 1.442695, %v1674_v18  ;;  %v1695_v2 = vmul.f32 1.442695, %v1675_v14  ;;  %v1683_v22 = vmul.f32 -0.5, %v1649_v10  ;;  %v1653_v60 = vsel %vm1652_vm8, %v3902_v61, %v1651_v56  ;;  %v2746_v40 = vpop.eup %2745 }
 0x469   : > { %v1597_v36 = vsel %vm1596_vm9, %v3892_v19, %v1595_v5  ;;  %v1656_v0 = vsel %vm1654_vm11, %v1655_v16, %v1653_v60  ;;  %v1604_v4 = vsel %vm1603_vm13, %v3898_v17, %v1602_v62  ;;  %v4066_v8 = vpop.eup %2747  ;;  %2457 = vmatprep.mubr.msk.f32.mxu0 %vm1722_vm10, %v2746_v40  ;;  %v1723_v61 = vsel %vm1722_vm10, %v2746_v40, 0.0 }
 0x46a   : > { %2757 = vpow2.f32 %v1693_v37  ;;  %v1600_v52 = vsel %vm1598_vm12, %v1599_v49, %v1597_v36  ;;  %v1711_v38 = vmul.f32 1.442695, %v1683_v22  ;;  %v1684_v15 = vmul.f32 -0.5, %v1656_v0  ;;  %2469 = vmatprep.mubr.msk.f32.mxu1 %vm1722_vm10, %v4066_v8  ;;  %1964 = vadd.xlane.f32.xlu1 %v1723_v61  ;;  %v1949_v37 = vld [vmem:[#allocation5 + $0x8] sm:$0xff] }
 0x46b   : > { %2759 = vpow2.f32 %v1695_v2  ;;  %v1676_v33 = vmul.f32 -0.5, %v1600_v52  ;;  %v1607_v19 = vsel %vm1605_vm14, %v1606_v53, %v1604_v4  ;;  %v1658_v9 = vmul.f32 %v2742_v63, %v3905_v28  ;;  %2470 = vmatmul.mubr.msk.f32.vlgmr.msra.gmra.mxu1 %vm1722_vm10, %v4053_v57  ;;  %v1950_v63 = vld [vmem:[#allocation5 + $0x10] sm:$0xff]  ;;  %v1951_v2 = vld [vmem:[#allocation5 + $0x18] sm:$0xff]  ;;  %v1953_v52 = vld [vmem:[#allocation5 + $0x28] sm:$0xff] }
 0x46c   : > { %vm1659_vm15 = vcmp.eq.f32.partialorder %v3905_v28, inf  ;;  %2761 = vpow2.f32 %v1711_v38  ;;  %v1713_v21 = vmul.f32 1.442695, %v1684_v15  ;;  %v1677_v49 = vmul.f32 -0.5, %v1607_v19  ;;  %v1954_v38 = vld [vmem:[#allocation5 + $0x30] sm:$0xff] }
 0x46d   : > { %v1697_v16 = vmul.f32 1.442695, %v1676_v33  ;;  %v1686_v50 = vmul.f32 -0.5, %v1670_v41  ;;  %v1701_v39 = vmul.f32 1.442695, %v1678_v30  ;;  %v1660_v17 = vsel %vm1659_vm15, %v3905_v28, %v1658_v9  ;;  %v1956_v9 = vld [vmem:[#allocation5 + $0x40] sm:$0xff] }
 0x46e   : > { %v1662_v25 = vand.u32 2147483648, %v3905_v28  ;;  %2763 = vpow2.f32 %v1713_v21  ;;  %v1699_v7 = vmul.f32 1.442695, %v1677_v49  ;;  %vm1661_vm0 = vcmp.eq.f32.partialorder %v3905_v28, 0.0  ;;  %v1957_v49 = vld [vmem:[#allocation5 + $0x48] sm:$0xff] }
 0x46f   : > { %2765 = vpow2.f32 %v1697_v16  ;;  %v1717_v26 = vmul.f32 1.442695, %v1686_v50  ;;  %v1731_v6 = vsel %vm1722_vm10, %v4066_v8, 0.0  ;;  %v1732_v3 = vsel %vm1722_vm10, %v4053_v57, 0.0  ;;  %v1955_v8 = vld [vmem:[#allocation5 + $0x38] sm:$0xff] }
 0x470   : > { %v1663_v55 = vsel %vm1661_vm0, %v1662_v25, %v1660_v17  ;;  %v2750_v20 = vpop.eup %2749  ;;  %2767 = vpow2.f32 %v1699_v7  ;;  %vm2012_vm1 = vcmask 7168   ;;  %v1958_v17 = vld [vmem:[#allocation5 + $0x50] sm:$0xff] }
 0x471   : > { %v1685_v24 = vmul.f32 -0.5, %v1663_v55  ;;  %v2752_v11 = vpop.eup %2751  ;;  %2769 = vpow2.f32 %v1701_v39  ;;  %v1725_v41 = vsel %vm1722_vm10, %v2750_v20, 0.0  ;;  %v1959_v55 = vld [vmem:[#allocation5 + $0x58] sm:$0xff] }
 0x472   : > { %v2754_v59 = vpop.eup %2753  ;;  %2472 = vmatprep.mubr.msk.f32.mxu1 %vm1722_vm10, %v2752_v11  ;;  %v1733_v34 = vsel %vm1722_vm10, %v2752_v11, 0.0  ;;  %v1960_v11 = vld [vmem:[#allocation5 + $0x60] sm:$0xff] }
 0x473   : > { %v1715_v48 = vmul.f32 1.442695, %v1685_v24  ;;  %v1724_v58 = vsel %vm1722_vm10, %v2754_v59, 0.0  ;;  %2458 = vmatmul.mubr.msk.f32.vlgmr.msra.gmra.mxu0 %vm1722_vm10, %v2754_v59 }
 0x474   : > { %v2756_v28 = vpop.eup %2755  ;;  %1966 = vadd.xlane.f32.xlu0 %v1724_v58  ;;  %2460 = vmatprep.mubr.msk.f32.mxu0 %vm1722_vm10, %v2750_v20 }
 0x475   : > { %2771 = vpow2.f32 %v1715_v48  ;;  %2473 = vmatmul.mubr.msk.f32.gmra.mxu1 %vm1722_vm10, %v2756_v28  ;;  %v1734_v42 = vsel %vm1722_vm10, %v2756_v28, 0.0  ;;  %v1961_v48 = vld [vmem:[#allocation5 + $0x68] sm:$0xff] }
 0x476   : > { %2773 = vpow2.f32 %v1717_v26 }
 0x477   : > { %v2758_v53 = vpop.eup %2757 }
 0x478   : > { %v2760_v31 = vpop.eup %2759  ;;  %2461 = vmatmul.mubr.msk.f32.gmra.mxu0 %vm1722_vm10, %v2758_v53  ;;  %v1726_v32 = vsel %vm1722_vm10, %v2758_v53, 0.0  ;;  %1968 = vadd.xlane.f32.xlu0 %v1725_v41  ;;  %v1962_v53 = vld [vmem:[#allocation5 + $0x70] sm:$0xff] }
 0x479   : > { %1970 = vadd.xlane.f32.xlu1 %v1726_v32  ;;  %v2762_v35 = vpop.eup %2761  ;;  %2463 = vmatprep.mubr.msk.f32.mxu0 %vm1722_vm10, %v2760_v31  ;;  %v1727_v27 = vsel %vm1722_vm10, %v2760_v31, 0.0  ;;  %v1963_v32 = vld [vmem:[#allocation5 + $0x78] sm:$0xff] }
 0x47a   : > { %2475 = vmatprep.mubr.msk.f32.mxu1 %vm1722_vm10, %v2762_v35  ;;  %v1735_v45 = vsel %vm1722_vm10, %v2762_v35, 0.0 }
 0x47b   : > { %v2764_v1 = vpop.eup %2763 }
 0x47c   : > { %v2766_v30 = vpop.eup %2765  ;;  %2476 = vmatmul.mubr.msk.f32.gmra.mxu1 %vm1722_vm10, %v2764_v1  ;;  %1972 = vadd.xlane.f32.xlu0 %v1727_v27  ;;  %v1736_v18 = vsel %vm1722_vm10, %v2764_v1, 0.0 }
 0x47d   : > { %v2768_v23 = vpop.eup %2767  ;;  %2464 = vmatmul.mubr.msk.f32.gmra.mxu0 %vm1722_vm10, %v2766_v30  ;;  %v1728_v44 = vsel %vm1722_vm10, %v2766_v30, 0.0  ;;  %v1748_v30 = vld [vmem:[#allocation4 + $0x60] sm:$0xff] }
 0x47e   : > { %v2770_v54 = vpop.eup %2769  ;;  %1974 = vadd.xlane.f32.xlu1 %v1728_v44  ;;  %2466 = vmatprep.mubr.msk.f32.mxu0 %vm1722_vm10, %v2768_v23  ;;  %v1729_v29 = vsel %vm1722_vm10, %v2768_v23, 0.0  ;;  %v1747_v44 = vld [vmem:[#allocation4 + $0x70] sm:$0xff] }
 0x47f   : > { %v1730_v12 = vsel %vm1722_vm10, %v2770_v54, 0.0 }
 0x480   : > { %1976 = vadd.xlane.f32.xlu0 %v1729_v29 }
 0x481   : > { %2467 = vmatmul.mubr.msk.f32.gmra.mxu0 %vm1722_vm10, %v2770_v54 }
 0x482   : > { %v2772_v51 = vpop.eup %2771  ;;  %1978 = vadd.xlane.f32.xlu1 %v1730_v12  ;;  %v1740_v12 = vld [vmem:[#allocation4 + $0x48] sm:$0xff] }
 0x483   : > { %v2774_v13 = vpop.eup %2773  ;;  %2478 = vmatprep.mubr.msk.f32.mxu1 %vm1722_vm10, %v2772_v51  ;;  %v1737_v43 = vsel %vm1722_vm10, %v2772_v51, 0.0 }
 0x484   : > { %2479 = vmatmul.mubr.msk.f32.gmra.mxu1 %vm1722_vm10, %v2774_v13  ;;  %1980 = vadd.xlane.f32.xlu0 %v1731_v6  ;;  %v1738_v14 = vsel %vm1722_vm10, %v2774_v13, 0.0  ;;  %v1739_v6 = vld [vmem:[#allocation4] sm:$0xff] }
 0x486   : > { %1982 = vadd.xlane.f32.xlu1 %v1732_v3  ;;  %v1750_v3 = vld [vmem:[#allocation4 + $0x20] sm:$0xff] }
 0x488   : > { %1984 = vadd.xlane.f32.xlu0 %v1733_v34 }
 0x48a   : > { %1986 = vadd.xlane.f32.xlu1 %v1734_v42 }
 0x48c   : > { %1988 = vadd.xlane.f32.xlu0 %v1735_v45  ;;  %v1742_v45 = vld [vmem:[#allocation4 + $0x78] sm:$0xff] }
 0x48e   : > { %1990 = vadd.xlane.f32.xlu1 %v1736_v18 }
 0x490   : > { %1992 = vadd.xlane.f32.xlu0 %v1737_v43  ;;  %v1749_v43 = vld [vmem:[#allocation4 + $0x18] sm:$0xff] }
 0x492   : > { %1994 = vadd.xlane.f32.xlu1 %v1738_v14 }
 0x4f3   : > { %v1965_v56 = vpop.xlane.xlu1 %1964 }
 0x4f4   : > { %v1996_v5 = vadd.f32 %v1965_v56, %v1948_v46 }
 0x4f6   : > { %2013 = vst.msk [vmem:[#allocation5] sm:$0xff] %vm2012_vm1, %v1996_v5  ;;  %v1741_v5 = vld [vmem:[#allocation4 + $0x68] sm:$0xff] }
 0x4fd   : > { %v1967_v10 = vpop.xlane.xlu0 %1966 }
 0x4fe   : > { %v1997_v62 = vadd.f32 %v1967_v10, %v1949_v37 }
 0x500   : > { %2014 = vst.msk [vmem:[#allocation5 + $0x8] sm:$0xff] %vm2012_vm1, %v1997_v62 }
 0x501   : > { %v1969_v22 = vpop.xlane.xlu0 %1968 }
 0x502   : > { %v1971_v60 = vpop.xlane.xlu1 %1970  ;;  %v1998_v36 = vadd.f32 %v1969_v22, %v1950_v63  ;;  %v1752_v22 = vld [vmem:[#allocation4 + $0x30] sm:$0xff] }
 0x503   : > { %v1999_v57 = vadd.f32 %v1971_v60, %v1951_v2  ;;  %v1744_v60 = vld [vmem:[#allocation4 + $0x50] sm:$0xff] }
 0x504   : > { %2015 = vst.msk [vmem:[#allocation5 + $0x10] sm:$0xff] %vm2012_vm1, %v1998_v36 }
 0x505   : > { %2016 = vst.msk [vmem:[#allocation5 + $0x18] sm:$0xff] %vm2012_vm1, %v1999_v57  ;;  %v1973_v0 = vpop.xlane.xlu0 %1972  ;;  %v1751_v57 = vld [vmem:[#allocation4 + $0x10] sm:$0xff] }
 0x506   : > { %v2000_v4 = vadd.f32 %v1973_v0, %v1952_v47 }
 0x507   : > { %v1975_v40 = vpop.xlane.xlu1 %1974 }
 0x508   : > { %2017 = vst.msk [vmem:[#allocation5 + $0x20] sm:$0xff] %vm2012_vm1, %v2000_v4  ;;  %v2001_v15 = vadd.f32 %v1975_v40, %v1953_v52  ;;  %v1743_v52 = vld [vmem:[#allocation4 + $0x8] sm:$0xff] }
 0x509   : > { %v1977_v33 = vpop.xlane.xlu0 %1976 }
 0x50a   : > { %2018 = vst.msk [vmem:[#allocation5 + $0x28] sm:$0xff] %vm2012_vm1, %v2001_v15  ;;  %v2002_v61 = vadd.f32 %v1977_v33, %v1954_v38  ;;  %v1746_v33 = vld [vmem:[#allocation4 + $0x38] sm:$0xff] }
 0x50b   : > { %v1979_v19 = vpop.xlane.xlu1 %1978 }
 0x50c   : > { %2019 = vst.msk [vmem:[#allocation5 + $0x30] sm:$0xff] %vm2012_vm1, %v2002_v61  ;;  %v2003_v21 = vadd.f32 %v1979_v19, %v1955_v8  ;;  %v1754_v19 = vld [vmem:[#allocation4 + $0x58] sm:$0xff] }
 0x50d   : > { %v1981_v16 = vpop.xlane.xlu0 %1980 }
 0x50e   : > { %2020 = vst.msk [vmem:[#allocation5 + $0x38] sm:$0xff] %vm2012_vm1, %v2003_v21  ;;  %v2004_v50 = vadd.f32 %v1981_v16, %v1956_v9  ;;  %v1745_v9 = vld [vmem:[#allocation4 + $0x40] sm:$0xff] }
 0x50f   : > { %v1983_v39 = vpop.xlane.xlu1 %1982 }
 0x510   : > { %2021 = vst.msk [vmem:[#allocation5 + $0x40] sm:$0xff] %vm2012_vm1, %v2004_v50  ;;  %v2005_v25 = vadd.f32 %v1983_v39, %v1957_v49  ;;  %v1753_v50 = vld [vmem:[#allocation4 + $0x28] sm:$0xff] }
 0x511   : > { %v1985_v7 = vpop.xlane.xlu0 %1984 }
 0x512   : > { %2022 = vst.msk [vmem:[#allocation5 + $0x48] sm:$0xff] %vm2012_vm1, %v2005_v25  ;;  %v2006_v20 = vadd.f32 %v1985_v7, %v1958_v17 }
 0x513   : > { %v1987_v24 = vpop.xlane.xlu1 %1986 }
 0x514   : > { %2023 = vst.msk [vmem:[#allocation5 + $0x50] sm:$0xff] %vm2012_vm1, %v2006_v20  ;;  %v2007_v26 = vadd.f32 %v1987_v24, %v1959_v55 }
 0x515   : > { %v1989_v59 = vpop.xlane.xlu0 %1988 }
 0x516   : > { %2024 = vst.msk [vmem:[#allocation5 + $0x58] sm:$0xff] %vm2012_vm1, %v2007_v26  ;;  %v2008_v58 = vadd.f32 %v1989_v59, %v1960_v11 }
 0x517   : > { %v1991_v28 = vpop.xlane.xlu1 %1990 }
 0x518   : > { %2025 = vst.msk [vmem:[#allocation5 + $0x60] sm:$0xff] %vm2012_vm1, %v2008_v58  ;;  %v2009_v31 = vadd.f32 %v1991_v28, %v1961_v48 }
 0x519   : > { %v1993_v41 = vpop.xlane.xlu0 %1992 }
 0x51a   : > { %2026 = vst.msk [vmem:[#allocation5 + $0x68] sm:$0xff] %vm2012_vm1, %v2009_v31  ;;  %v2010_v35 = vadd.f32 %v1993_v41, %v1962_v53 }
 0x51b   : > { %v1995_v1 = vpop.xlane.xlu1 %1994 }
 0x51c   : > { %2027 = vst.msk [vmem:[#allocation5 + $0x70] sm:$0xff] %vm2012_vm1, %v2010_v35  ;;  %v2011_v27 = vadd.f32 %v1995_v1, %v1963_v32 }
 0x51e   : > { %2028 = vst.msk [vmem:[#allocation5 + $0x78] sm:$0xff] %vm2012_vm1, %v2011_v27 }
 0x52b   : > { %v2471_v23 = vpop.f32.mrf.mxu1 }
 0x52c   : > { %v1925_v54 = vadd.f32 %v2471_v23, %v1748_v30 }
 0x52d   : > { %v1877_v29 = vpop.f32.mrf.mxu1 }
 0x52e   : > { %1941 = vst [vmem:[#allocation4 + $0x60] sm:$0xff] %v1925_v54  ;;  %v1924_v51 = vadd.f32 %v1877_v29, %v1747_v44 }
 0x530   : > { %1940 = vst [vmem:[#allocation4 + $0x70] sm:$0xff] %v1924_v51 }
 0x533   : > { %v2459_v13 = vpop.f32.mrf.mxu0 }
 0x534   : > { %v1917_v34 = vadd.f32 %v2459_v13, %v1740_v12 }
 0x535   : > { %v1837_v42 = vpop.f32.mrf.mxu0  ;;  %v2474_v18 = vpop.f32.mrf.mxu1 }
 0x536   : > { %1933 = vst [vmem:[#allocation4 + $0x48] sm:$0xff] %v1917_v34  ;;  %v1916_v14 = vadd.f32 %v1837_v42, %v1739_v6  ;;  %v1927_v46 = vadd.f32 %v2474_v18, %v1750_v3 }
 0x537   : > { %v1887_v37 = vpop.f32.mrf.mxu1 }
 0x538   : > { %v2462_v56 = vpop.f32.mrf.mxu0  ;;  %1932 = vst [vmem:[#allocation4] sm:$0xff] %v1916_v14  ;;  %1943 = vst [vmem:[#allocation4 + $0x20] sm:$0xff] %v1927_v46  ;;  %v1926_v62 = vadd.f32 %v1887_v37, %v1749_v43 }
 0x539   : > { %v1919_v10 = vadd.f32 %v2462_v56, %v1742_v45 }
 0x53a   : > { %v1847_v63 = vpop.f32.mrf.mxu0  ;;  %1942 = vst [vmem:[#allocation4 + $0x18] sm:$0xff] %v1926_v62 }
 0x53b   : > { %1935 = vst [vmem:[#allocation4 + $0x78] sm:$0xff] %v1919_v10  ;;  %v1918_v2 = vadd.f32 %v1847_v63, %v1741_v5 }
 0x53c   : > { %v2477_v36 = vpop.f32.mrf.mxu1 }
 0x53d   : > { %1934 = vst [vmem:[#allocation4 + $0x68] sm:$0xff] %v1918_v2  ;;  %v2465_v47 = vpop.f32.mrf.mxu0  ;;  %v1929_v0 = vadd.f32 %v2477_v36, %v1752_v22 }
 0x53e   : > { %v1921_v4 = vadd.f32 %v2465_v47, %v1744_v60  ;;  %v1897_v40 = vpop.f32.mrf.mxu1 }
 0x53f   : > { %1945 = vst [vmem:[#allocation4 + $0x30] sm:$0xff] %v1929_v0  ;;  %v1857_v38 = vpop.f32.mrf.mxu0  ;;  %v1928_v15 = vadd.f32 %v1897_v40, %v1751_v57 }
 0x540   : > { %1937 = vst [vmem:[#allocation4 + $0x50] sm:$0xff] %v1921_v4  ;;  %v1920_v8 = vadd.f32 %v1857_v38, %v1743_v52 }
 0x541   : > { %1944 = vst [vmem:[#allocation4 + $0x10] sm:$0xff] %v1928_v15  ;;  %v2468_v61 = vpop.f32.mrf.mxu0 }
 0x542   : > { %1936 = vst [vmem:[#allocation4 + $0x8] sm:$0xff] %v1920_v8  ;;  %v1923_v21 = vadd.f32 %v2468_v61, %v1746_v33 }
 0x543   : > { %v1867_v49 = vpop.f32.mrf.mxu0 }
 0x544   : > { %v2480_v16 = vpop.f32.mrf.mxu1  ;;  %1939 = vst [vmem:[#allocation4 + $0x38] sm:$0xff] %v1923_v21  ;;  %v1922_v17 = vadd.f32 %v1867_v49, %v1745_v9 }
 0x545   : > { %v1931_v39 = vadd.f32 %v2480_v16, %v1754_v19  ;;  %2032 = sbr.rel (%p2381_p4) target bundleno = 1525 (0x5f5), region = 60 }
 0x546   : > { %v1907_v25 = vpop.f32.mrf.mxu1  ;;  %1938 = vst [vmem:[#allocation4 + $0x40] sm:$0xff] %v1922_v17 }
 0x547   : > { %1947 = vst [vmem:[#allocation4 + $0x58] sm:$0xff] %v1931_v39  ;;  %v1930_v7 = vadd.f32 %v1907_v25, %v1753_v50 }
 0x549   : > { %1946 = vst [vmem:[#allocation4 + $0x28] sm:$0xff] %v1930_v7 }
 0x54a   : > { %v2051_v55 = vld [vmem:[#allocation5 + $0x10] sm:$0xff]  ;;  %v2049_v20 = vld [vmem:[#allocation5] sm:$0xff]  ;;  %v2052_v24 = vld [vmem:[#allocation5 + $0x18] sm:$0xff]  ;;  %v3059_v11 = vmov 0  }
 0x54b   : > { %2776 = vset.pattern.permute.xlu1 %v3059_v11  ;;  %2775 = vset.pattern.permute.xlu0 %v3059_v11  ;;  %2777 = vrcp.f32 %v2051_v55  ;;  %v2050_v26 = vld [vmem:[#allocation5 + $0x8] sm:$0xff]  ;;  %v2053_v48 = vld [vmem:[#allocation5 + $0x20] sm:$0xff]  ;;  %v2056_v58 = vld [vmem:[#allocation5 + $0x38] sm:$0xff] }
 0x54c   : > { %2779 = vrcp.f32 %v2049_v20  ;;  %v2054_v59 = vld [vmem:[#allocation5 + $0x28] sm:$0xff]  ;;  %v2055_v28 = vld [vmem:[#allocation5 + $0x30] sm:$0xff]  ;;  %v2057_v31 = vld [vmem:[#allocation5 + $0x40] sm:$0xff] }
 0x54d   : > { %2781 = vrcp.f32 %v2052_v24  ;;  %v2058_v53 = vld [vmem:[#allocation5 + $0x48] sm:$0xff]  ;;  %v2060_v1 = vld [vmem:[#allocation5 + $0x58] sm:$0xff]  ;;  %v2059_v30 = vld [vmem:[#allocation5 + $0x50] sm:$0xff] }
 0x54e   : > { %2783 = vrcp.f32 %v2050_v26  ;;  %v2062_v44 = vld [vmem:[#allocation5 + $0x68] sm:$0xff]  ;;  %v2061_v29 = vld [vmem:[#allocation5 + $0x60] sm:$0xff]  ;;  %v2064_v12 = vld [vmem:[#allocation5 + $0x78] sm:$0xff] }
 0x54f   : > { %2785 = vrcp.f32 %v2054_v59  ;;  %v2063_v6 = vld [vmem:[#allocation5 + $0x70] sm:$0xff]  ;;  %v2035_v56 = vld [vmem:[#allocation4 + $0x68] sm:$0xff]  ;;  %v2033_v5 = vld [vmem:[#allocation4] sm:$0xff] }
 0x550   : > { %2787 = vrcp.f32 %v2053_v48  ;;  %v2036_v2 = vld [vmem:[#allocation4 + $0x78] sm:$0xff]  ;;  %v2034_v22 = vld [vmem:[#allocation4 + $0x48] sm:$0xff]  ;;  %v2038_v0 = vld [vmem:[#allocation4 + $0x50] sm:$0xff] }
 0x551   : > { %2789 = vrcp.f32 %v2056_v58  ;;  %v2037_v52 = vld [vmem:[#allocation4 + $0x8] sm:$0xff]  ;;  %v2040_v33 = vld [vmem:[#allocation4 + $0x38] sm:$0xff]  ;;  %v2039_v8 = vld [vmem:[#allocation4 + $0x40] sm:$0xff] }
 0x552   : > { %2791 = vrcp.f32 %v2055_v28  ;;  %v2042_v16 = vld [vmem:[#allocation4 + $0x60] sm:$0xff]  ;;  %v2041_v49 = vld [vmem:[#allocation4 + $0x70] sm:$0xff]  ;;  %v2043_v55 = vld [vmem:[#allocation4 + $0x18] sm:$0xff] }
 0x553   : > { %2793 = vrcp.f32 %v2058_v53  ;;  %v2044_v7 = vld [vmem:[#allocation4 + $0x20] sm:$0xff]  ;;  %v2046_v59 = vld [vmem:[#allocation4 + $0x30] sm:$0xff] }
 0x554   : > { %2795 = vrcp.f32 %v2057_v31  ;;  %v2045_v48 = vld [vmem:[#allocation4 + $0x10] sm:$0xff] }
 0x555   : > { %2797 = vrcp.f32 %v2060_v1 }
 0x556   : > { %2799 = vrcp.f32 %v2059_v30 }
 0x557   : > { %2801 = vrcp.f32 %v2062_v44 }
 0x558   : > { %v2778_v41 = vpop.eup %2777  ;;  %2803 = vrcp.f32 %v2061_v29 }
 0x559   : > { %v2780_v32 = vpop.eup %2779  ;;  %2093 = vperm.xlu1 %2776, %v2778_v41   ;;  %2805 = vrcp.f32 %v2064_v12  ;;  %v2048_v41 = vld [vmem:[#allocation4 + $0x58] sm:$0xff] }
 0x55a   : > { %v2782_v35 = vpop.eup %2781  ;;  %2083 = vperm.xlu0 %2775, %v2780_v32   ;;  %2807 = vrcp.f32 %v2063_v6  ;;  %v2047_v32 = vld [vmem:[#allocation4 + $0x28] sm:$0xff] }
 0x55b   : > { %v2784_v27 = vpop.eup %2783 }
 0x55c   : > { %v2786_v23 = vpop.eup %2785 }
 0x55d   : > { %2098 = vperm.xlu1 %2776, %v2782_v35   ;;  %v2788_v54 = vpop.eup %2787 }
 0x55e   : > { %2088 = vperm.xlu0 %2775, %v2784_v27   ;;  %v2790_v51 = vpop.eup %2789 }
 0x55f   : > { %v2792_v13 = vpop.eup %2791 }
 0x560   : > { %v2794_v3 = vpop.eup %2793 }
 0x561   : > { %2108 = vperm.xlu1 %2776, %v2786_v23   ;;  %v2796_v34 = vpop.eup %2795 }
 0x562   : > { %2103 = vperm.xlu0 %2775, %v2788_v54   ;;  %v2798_v42 = vpop.eup %2797 }
 0x563   : > { %v2800_v45 = vpop.eup %2799 }
 0x564   : > { %v2802_v18 = vpop.eup %2801 }
 0x565   : > { %2118 = vperm.xlu1 %2776, %v2790_v51   ;;  %v2804_v43 = vpop.eup %2803 }
 0x566   : > { %2113 = vperm.xlu0 %2775, %v2792_v13   ;;  %v2806_v14 = vpop.eup %2805 }
 0x567   : > { %v2808_v46 = vpop.eup %2807 }
 0x569   : > { %2128 = vperm.xlu1 %2776, %v2794_v3  }
 0x56a   : > { %2123 = vperm.xlu0 %2775, %v2796_v34  }
 0x56d   : > { %2138 = vperm.xlu1 %2776, %v2798_v42  }
 0x56e   : > { %2133 = vperm.xlu0 %2775, %v2800_v45  }
 0x571   : > { %2148 = vperm.xlu1 %2776, %v2802_v18  }
 0x572   : > { %2143 = vperm.xlu0 %2775, %v2804_v43  }
 0x575   : > { %2158 = vperm.xlu1 %2776, %v2806_v14  }
 0x576   : > { %2153 = vperm.xlu0 %2775, %v2808_v46  }
 0x5d4   : > { %v2094_v37 = vpop.permute.xlu1 %2093 }
 0x5d5   : > { %v2163_v10 = vmul.f32 %v2094_v37, %v2035_v56  ;;  %v2084_v62 = vpop.permute.xlu0 %2083 }
 0x5d6   : > { %v2161_v63 = vmul.f32 %v2084_v62, %v2033_v5 }
 0x5d7   : > { %2179 = vst [vmem:[%s3322_s20 + $0x10] sm:$0xff] %v2163_v10 }
 0x5d8   : > { %2177 = vst [vmem:[%s3322_s20] sm:$0xff] %v2161_v63  ;;  %v2099_v60 = vpop.permute.xlu1 %2098 }
 0x5d9   : > { %v2164_v36 = vmul.f32 %v2099_v60, %v2036_v2  ;;  %v2089_v57 = vpop.permute.xlu0 %2088 }
 0x5da   : > { %v2162_v47 = vmul.f32 %v2089_v57, %v2034_v22 }
 0x5db   : > { %2180 = vst [vmem:[%s3322_s20 + $0x18] sm:$0xff] %v2164_v36 }
 0x5dc   : > { %2178 = vst [vmem:[%s3322_s20 + $0x8] sm:$0xff] %v2162_v47  ;;  %v2109_v4 = vpop.permute.xlu1 %2108 }
 0x5dd   : > { %v2166_v40 = vmul.f32 %v2109_v4, %v2038_v0  ;;  %v2104_v38 = vpop.permute.xlu0 %2103 }
 0x5de   : > { %v2165_v15 = vmul.f32 %v2104_v38, %v2037_v52 }
 0x5df   : > { %2182 = vst [vmem:[%s3322_s20 + $0x28] sm:$0xff] %v2166_v40 }
 0x5e0   : > { %2181 = vst [vmem:[%s3322_s20 + $0x20] sm:$0xff] %v2165_v15  ;;  %v2119_v61 = vpop.permute.xlu1 %2118 }
 0x5e1   : > { %v2168_v19 = vmul.f32 %v2119_v61, %v2040_v33  ;;  %v2114_v9 = vpop.permute.xlu0 %2113 }
 0x5e2   : > { %v2167_v21 = vmul.f32 %v2114_v9, %v2039_v8 }
 0x5e3   : > { %2184 = vst [vmem:[%s3322_s20 + $0x38] sm:$0xff] %v2168_v19 }
 0x5e4   : > { %2183 = vst [vmem:[%s3322_s20 + $0x30] sm:$0xff] %v2167_v21  ;;  %v2129_v50 = vpop.permute.xlu1 %2128 }
 0x5e5   : > { %v2170_v39 = vmul.f32 %v2129_v50, %v2042_v16  ;;  %v2124_v17 = vpop.permute.xlu0 %2123 }
 0x5e6   : > { %v2169_v25 = vmul.f32 %v2124_v17, %v2041_v49 }
 0x5e7   : > { %2186 = vst [vmem:[%s3322_s20 + $0x48] sm:$0xff] %v2170_v39 }
 0x5e8   : > { %2185 = vst [vmem:[%s3322_s20 + $0x40] sm:$0xff] %v2169_v25  ;;  %v2139_v20 = vpop.permute.xlu1 %2138 }
 0x5e9   : > { %v2172_v24 = vmul.f32 %v2139_v20, %v2044_v7  ;;  %v2134_v11 = vpop.permute.xlu0 %2133 }
 0x5ea   : > { %v2171_v26 = vmul.f32 %v2134_v11, %v2043_v55 }
 0x5eb   : > { %2188 = vst [vmem:[%s3322_s20 + $0x58] sm:$0xff] %v2172_v24 }
 0x5ec   : > { %2187 = vst [vmem:[%s3322_s20 + $0x50] sm:$0xff] %v2171_v26  ;;  %v2149_v58 = vpop.permute.xlu1 %2148 }
 0x5ed   : > { %v2174_v28 = vmul.f32 %v2149_v58, %v2046_v59  ;;  %v2144_v53 = vpop.permute.xlu0 %2143 }
 0x5ee   : > { %v2173_v31 = vmul.f32 %v2144_v53, %v2045_v48 }
 0x5ef   : > { %2190 = vst [vmem:[%s3322_s20 + $0x68] sm:$0xff] %v2174_v28 }
 0x5f0   : > { %2189 = vst [vmem:[%s3322_s20 + $0x60] sm:$0xff] %v2173_v31  ;;  %v2159_v35 = vpop.permute.xlu1 %2158 }
 0x5f1   : > { %v2176_v1 = vmul.f32 %v2159_v35, %v2048_v41  ;;  %v2154_v27 = vpop.permute.xlu0 %2153 }
 0x5f2   : > { %v2175_v30 = vmul.f32 %v2154_v27, %v2047_v32 }
 0x5f3   : > { %2192 = vst [vmem:[%s3322_s20 + $0x78] sm:$0xff] %v2176_v1 }
 0x5f4   : > { %2191 = vst [vmem:[%s3322_s20 + $0x70] sm:$0xff] %v2175_v30 }
 0x5f5 PF: > { %s2392_s21 = sshll.u32 %s3035_s22, 11  ;;  %s2207_s10 = sshll.u32 %s3322_s20, 4  ;;  %s4183_s10 = int_to_ptr.vmem [resolvable:$true] %s2207_s10 }
 0x5f6   : > { %s4180_s9 = scalar_lea.hbm %s4249_s4, %s2392_s21  ;;  %s2194_s15 = scalar_lea.sflag [#allocation8], %s3299_s7 }
 0x5f7   : > { %s2919_s8 = scalar_lea.vmem %s4183_s10, 2048  ;;  %p4285_p5 = scmp.ne.s32.totalorder %s4279_s29, 0 }
 0x5f8   : > { %p2920_p10 = scmp.ne.s32.totalorder %s4183_s10, %s2919_s8  ;;  %s3060_s14 = smov [#allocation13]  }
 0x5f9   : > { %s2923_s13 = sshll.u32 %s3060_s14, 4  ;;  %s2924_s13 = int_to_ptr.vmem [resolvable:$false] %s2923_s13 }
 0x5fa   : > { %p2921_p2 = pnand %p2920_p10, %p4285_p5  ;;  %s2925_s22 = scalar_lea.vmem %s2924_s13, 4096 }
 0x5fb   : > { %p2926_p6 = scmp.lt.s32.totalorder %s4183_s10, %s2924_s13  ;;  %p2927_p7 = scmp.lt.s32.totalorder %s2925_s22, %s2919_s8 }
 0x5fc   : > { %p2922_p0 = pneg %p2921_p2 }
 0x5fd   : > { %p2928_p9 = por %p2927_p7, %p2926_p6 }
 0x5ff   : > { %p2929_p11 = pnand %p2928_p9, %p2922_p0 }
 0x601   : > { %2932 = shalt.err (!%p2929_p11)
}
 0x602   : > { %s2933_s2 = scalar_lea.hbm %s4180_s9, 2048  ;;  %s2937_s24 = scalar_lea.hbm %s4249_s4, 4096 }
 0x603   : > { %p2934_p3 = scmp.ne.s32.totalorder %s4180_s9, %s2933_s2  ;;  %p2938_p1 = scmp.lt.s32.totalorder %s4180_s9, %s4249_s4 }
 0x604   : > { %p2939_p8 = scmp.lt.s32.totalorder %s2937_s24, %s2933_s2 }
 0x605   : > { %p2935_p12 = pnand %p2934_p3, %p4285_p5 }
 0x606   : > { %p2940_p4 = por %p2939_p8, %p2938_p1 }
 0x607   : > { %p2936_p13 = pneg %p2935_p12 }
 0x609   : > { %p2941_p10 = pnand %p2940_p4, %p2936_p13 }
 0x60b   : > { %2944 = shalt.err (!%p2941_p10)
}
 0x60c   : > { %s3061_s5 = smov 128   ;;  %s3062_s28 = smov 8  }
 0x60d   : > { %2587 = dma.vmem_to_hbm [thread:$0]  (%p4285_p5), %s4183_s10, 2048, %s4180_s9, %s2194_s15, %s3061_s5, %s3061_s5, %s3062_s28  }
 0x60e PF: > { %s4286_s20 = sld [smem:[#allocation24_spill]]  ;;  %p2610_p2 = scmp.ge.s32.totalorder %s3047_s25, 2 }
 0x60f   : > { %s2222_s11 = sand.u32 1, %s3019_s18  }
 0x610   : > { %s2223_s21 = scalar_lea.sflag [#allocation8], %s2222_s11 }
 0x614   : > { %p4287_p0 = scmp.ne.s32.totalorder %s4286_s20, 0 }
 0x616   : > { %p2604_p6 = pnand %p2610_p2, %p4287_p0 }
 0x618   : > { %p2605_p7 = pneg %p2604_p6 }
 0x61a   : > { %3002 = dma.done.wait (%p2605_p7), %s2223_s21, 2048  }
 0x61b   : > { %3004 = vsyncadd (%p2605_p7), %s2223_s21, 4294965248  ;;  %s21_s25 = sadd.s32 1, %s3047_s25   ;;  %s4288_s29 = sld [smem:[#allocation22_spill]] }
 0x61c   : > { %p18_p9 = scmp.ge.s32.totalorder %s21_s25, 8   ;;  %s4289_s7 = sld [smem:[#allocation18_spill]] }
 0x61d   : > { %s4290_s20 = sld [smem:[#allocation23_spill]]  ;;  %s4294_s15 = smov %s3011_s16 }
 0x61e   : > { %s4291_s22 = sld [smem:[#allocation19_spill]]  ;;  %s4295_s16 = smov %s3015_s17 }
 0x61f   : > { %s4292_s27 = sld [smem:[#allocation20_spill]]  ;;  %s4297_s18 = smov %s3023_s19 }
 0x620   : > { %s4293_s24 = sld [smem:[#allocation21_spill]]  ;;  %s4299_s21 = smov %s3039_s23 }
 0x621   : > { %s4296_s17 = smov %s4288_s29  ;;  %20 = sbr.rel (!%p18_p9) target bundleno = 13 (0xd), region = 115 }
 0x622   : > { %s4298_s19 = smov %s4289_s7 }
 0x625   : > { %s4300_s23 = smov %s4292_s27 }
 0x626   :  { %2228 = vsyncpa [#allocation7], 1 }
 0x627   :  { %2230 = vsyncpa [#allocation7 + $0x1], 1 }
 0x628   :  { %2231 = vsyncpa [#allocation10], 1 }
 0x629   :  { %2232 = vsyncpa [#allocation8], 1 }
 0x62a   :  { %2234 = vsyncpa [#allocation8 + $0x1], 1 }

</bundles_post_ra>
